<compile_context>
chip_gen: v7x
topology: tpu7x:2x2x1
jax: 0.10.0
libtpu: 0.0.40
codegen_flags: <defaults>
</compile_context>

<pallas_src>
import functools

import jax
import jax.numpy as jnp
from jax import lax
from jax.experimental import pallas as pl
from jax.experimental.pallas import tpu as pltpu


def _round_up(n, m):
    return ((n + m - 1) // m) * m


# ---------------------------------------------------------------------------
# Kernel 1: tiled GEMM with fused BatchNorm affine (+ bias) / residual / ReLU epilogue.
#   out = relu( (x @ w) * scale + bias (+ residual) )
# Blocks: x (tm, K), w (K, tn), scale/bias (1, tn), residual/out (tm, tn).
# ---------------------------------------------------------------------------
def _gemm_bn_kernel(x_ref, w_ref, s_ref, b_ref, *rest, relu, has_residual):
    if has_residual:
        res_ref, out_ref = rest
    else:
        (out_ref,) = rest
    acc = jnp.dot(x_ref[...], w_ref[...], preferred_element_type=jnp.float32)
    y = acc * s_ref[...] + b_ref[...]
    if has_residual:
        y = y + res_ref[...]
    if relu:
        y = jnp.maximum(y, 0.0)
    out_ref[...] = y.astype(out_ref.dtype)


_GEMM_CACHE = {}


def _get_gemm_call(M_pad, K_pad, N_pad, tm, tn, relu, has_res, compute_dtype):
    key = (M_pad, K_pad, N_pad, tm, tn, relu, has_res, jnp.dtype(compute_dtype).name)
    if key in _GEMM_CACHE:
        return _GEMM_CACHE[key]

    kernel = functools.partial(_gemm_bn_kernel, relu=relu, has_residual=has_res)
    in_specs = [
        pl.BlockSpec((tm, K_pad), lambda i, j: (i, 0)),
        pl.BlockSpec((K_pad, tn), lambda i, j: (0, j)),
        pl.BlockSpec((1, tn), lambda i, j: (0, j)),
        pl.BlockSpec((1, tn), lambda i, j: (0, j)),
    ]
    if has_res:
        in_specs.append(pl.BlockSpec((tm, tn), lambda i, j: (i, j)))

    # Computed VMEM budget: double-buffered live blocks + headroom, capped < v7x physical VMEM.
    isz = jnp.dtype(compute_dtype).itemsize
    need = 2 * (tm * K_pad * isz + K_pad * tn * isz + 2 * tn * 4
                + tm * tn * 4 * (2 if has_res else 1)) + (4 << 20)
    vmem_bytes = int(min(max(need, 16 << 20), 48 << 20))

    call = pl.pallas_call(
        kernel,
        out_shape=jax.ShapeDtypeStruct((M_pad, N_pad), jnp.float32),
        grid_spec=pltpu.PrefetchScalarGridSpec(
            num_scalar_prefetch=0,
            grid=(M_pad // tm, N_pad // tn),
            in_specs=in_specs,
            out_specs=pl.BlockSpec((tm, tn), lambda i, j: (i, j)),
        ),
        compiler_params=pltpu.CompilerParams(
            dimension_semantics=("parallel", "parallel"),
            vmem_limit_bytes=vmem_bytes),
    )
    fn = jax.jit(call)          # jit-cache: identical layers reuse one compiled kernel
    _GEMM_CACHE[key] = fn
    return fn


def _gemm_bn(x, w, scale, bias, *, relu, residual=None, compute_dtype=jnp.float32):
    """(M,K)@(K,N) * scale + bias (+res) (relu); zero-padding is exact for this math."""
    M, K = x.shape
    _, N = w.shape
    K_pad = _round_up(K, 128)
    N_pad = _round_up(N, 128)
    tn = N_pad if N_pad <= 1024 else 1024
    N_pad = _round_up(N_pad, tn)
    M_pad = _round_up(M, 8)
    tm = M_pad if M_pad <= 512 else 512
    M_pad = _round_up(M_pad, tm)

    x_p = jnp.zeros((M_pad, K_pad), compute_dtype).at[:M, :K].set(x.astype(compute_dtype))
    w_p = jnp.zeros((K_pad, N_pad), compute_dtype).at[:K, :N].set(w.astype(compute_dtype))
    s_p = jnp.zeros((1, N_pad), jnp.float32).at[0, :N].set(scale)
    b_p = jnp.zeros((1, N_pad), jnp.float32).at[0, :N].set(bias)
    args = [x_p, w_p, s_p, b_p]
    if residual is not None:
        r_p = jnp.zeros((M_pad, N_pad), jnp.float32).at[:M, :N].set(residual)
        args.append(r_p)

    fn = _get_gemm_call(M_pad, K_pad, N_pad, tm, tn, relu, residual is not None, compute_dtype)
    out = fn(*args)
    return out[:M, :N]


# ---------------------------------------------------------------------------
# Kernel 2: 3x3/stride-2 max-pool as a max-reduce over 9 pre-shifted views.
# ---------------------------------------------------------------------------
def _maxpool_kernel(x_ref, out_ref):
    out_ref[...] = jnp.max(x_ref[...], axis=0)


def _maxpool_3x3_s2(x):
    B, H, W, C = x.shape
    Ho = (H + 2 - 3) // 2 + 1
    Wo = (W + 2 - 3) // 2 + 1
    neg = jnp.finfo(x.dtype).min
    xp = jnp.pad(x, ((0, 0), (1, 1), (1, 1), (0, 0)), constant_values=neg)
    views = []
    for di in range(3):
        for dj in range(3):
            views.append(lax.slice(
                xp, (0, di, dj, 0),
                (B, di + (Ho - 1) * 2 + 1, dj + (Wo - 1) * 2 + 1, C),
                (1, 2, 2, 1)))
    M = B * Ho * Wo
    stk = jnp.stack(views, axis=0).reshape(9, M, C)

    M_pad = _round_up(M, 8)
    tm = M_pad if M_pad <= 512 else 512
    M_pad = _round_up(M_pad, tm)
    C_pad = _round_up(C, 128)
    stk_p = jnp.full((9, M_pad, C_pad), neg, x.dtype).at[:, :M, :C].set(stk)

    out = pl.pallas_call(
        _maxpool_kernel,
        out_shape=jax.ShapeDtypeStruct((M_pad, C_pad), x.dtype),
        grid_spec=pltpu.PrefetchScalarGridSpec(
            num_scalar_prefetch=0,
            grid=(M_pad // tm,),
            in_specs=[pl.BlockSpec((9, tm, C_pad), lambda i: (0, i, 0))],
            out_specs=pl.BlockSpec((tm, C_pad), lambda i: (i, 0)),
        ),
        compiler_params=pltpu.CompilerParams(dimension_semantics=("parallel",)),
    )(stk_p)
    return out[:M, :C].reshape(B, Ho, Wo, C)


# ---------------------------------------------------------------------------
# Kernel 3: global average pool (B, H*W, C) -> (B, C).
# ---------------------------------------------------------------------------
def _avgpool_kernel(x_ref, out_ref, *, inv_s):
    out_ref[...] = jnp.sum(x_ref[...].astype(jnp.float32), axis=1) * inv_s


def _global_avgpool(x):
    B, H, W, C = x.shape
    S = H * W
    B_pad = _round_up(B, 8)
    C_pad = _round_up(C, 128)
    x3 = jnp.zeros((B_pad, S, C_pad), jnp.float32).at[:B, :, :C].set(
        x.reshape(B, S, C).astype(jnp.float32))
    out = pl.pallas_call(
        functools.partial(_avgpool_kernel, inv_s=1.0 / S),
        out_shape=jax.ShapeDtypeStruct((B_pad, C_pad), jnp.float32),
        grid_spec=pltpu.PrefetchScalarGridSpec(
            num_scalar_prefetch=0,
            grid=(1,),
            in_specs=[pl.BlockSpec((B_pad, S, C_pad), lambda i: (0, 0, 0))],
            out_specs=pl.BlockSpec((B_pad, C_pad), lambda i: (0, 0)),
        ),
    )(x3)
    return out[:B, :C]


# ---------------------------------------------------------------------------
# Conv layer = im2col (wrapper glue) + fused GEMM/BN/ReLU/residual Pallas kernel.
# ---------------------------------------------------------------------------
def _fold_bn(bn, eps=1e-5):
    scale = bn["gamma"] / jnp.sqrt(bn["var"] + eps)
    bias = bn["beta"] - bn["mean"] * scale
    return scale, bias


def _conv_bn(x, w, bn, *, stride, padding, relu, residual=None, compute_dtype=jnp.float32):
    B, H, W, C = x.shape
    kh, kw, _, O = w.shape
    Ho = (H + 2 * padding - kh) // stride + 1
    Wo = (W + 2 * padding - kw) // stride + 1
    if padding:
        x = jnp.pad(x, ((0, 0), (padding, padding), (padding, padding), (0, 0)))
    if kh == 1 and kw == 1:
        patches = x[:, ::stride, ::stride, :] if stride > 1 else x
    else:
        cols = []
        for di in range(kh):
            for dj in range(kw):
                cols.append(lax.slice(
                    x, (0, di, dj, 0),
                    (B, di + (Ho - 1) * stride + 1, dj + (Wo - 1) * stride + 1, C),
                    (1, stride, stride, 1)))
        patches = jnp.concatenate(cols, axis=-1)
    K = kh * kw * C
    xm = patches.reshape(B * Ho * Wo, K)
    wm = w.reshape(K, O)                       # (kh,kw,C,O) row order matches patch concat order
    scale, bias = _fold_bn(bn)
    res_m = None if residual is None else residual.reshape(B * Ho * Wo, O)
    ym = _gemm_bn(xm, wm, scale, bias, relu=relu, residual=res_m, compute_dtype=compute_dtype)
    return ym.reshape(B, Ho, Wo, O)


def _bottleneck(x, blk, stride, compute_dtype):
    identity = x
    out = _conv_bn(x, blk["c1_w"], blk["bn1"], stride=1, padding=0, relu=True,
                   compute_dtype=compute_dtype)
    out = _conv_bn(out, blk["c2_w"], blk["bn2"], stride=stride, padding=1, relu=True,
                   compute_dtype=compute_dtype)
    if "ds_w" in blk:
        identity = _conv_bn(x, blk["ds_w"], blk["ds_bn"], stride=stride, padding=0, relu=False,
                            compute_dtype=compute_dtype)
    # conv3 + BN + residual add + final ReLU all fused in one GEMM epilogue.
    return _conv_bn(out, blk["c3_w"], blk["bn3"], stride=1, padding=0, relu=True,
                    residual=identity, compute_dtype=compute_dtype)


# ---------------------------------------------------------------------------
# EncoderCNN forward: resnet50 body -> flatten -> Linear embed -> BatchNorm1d.
# images: (B, 3, H, W) float32 (NCHW like PyTorch) -> features (B, embed_size).
# ---------------------------------------------------------------------------
def encoder_cnn_forward(images, params, *, compute_dtype=jnp.float32):
    x = jnp.transpose(images, (0, 2, 3, 1)).astype(jnp.float32)        # NCHW -> NHWC
    x = _conv_bn(x, params["conv1_w"], params["bn1"], stride=2, padding=3, relu=True,
                 compute_dtype=compute_dtype)
    x = _maxpool_3x3_s2(x)
    strides = [1, 2, 2, 2]
    for li, blocks in enumerate(params["layers"]):
        for bi, blk in enumerate(blocks):
            s = strides[li] if bi == 0 else 1
            x = _bottleneck(x, blk, s, compute_dtype)
    feats = _global_avgpool(x)                                         # (B, 2048)
    # embed Linear + BatchNorm1d (inference affine) folded into one GEMM epilogue.
    scale, bias = _fold_bn(params["bn1d"])
    eff_bias = params["embed_b"] * scale + bias
    return _gemm_bn(feats, params["embed_w"], scale, eff_bias, relu=False,
                    compute_dtype=compute_dtype)


# ---------------------------------------------------------------------------
# Deterministic parameter init (torchvision resnet50 shapes; He/Xavier-ish fills).
# ---------------------------------------------------------------------------
def init_params(key, embed_size):
    keys = iter(jax.random.split(key, 200))
    nk = lambda: next(keys)

    def init_bn(c):
        k1, k2, k3, k4 = jax.random.split(nk(), 4)
        return {"gamma": jax.random.uniform(k1, (c,), jnp.float32, 0.8, 1.2),
                "beta": 0.1 * jax.random.normal(k2, (c,), jnp.float32),
                "mean": 0.1 * jax.random.normal(k3, (c,), jnp.float32),
                "var": jax.random.uniform(k4, (c,), jnp.float32, 0.5, 1.5)}

    def init_conv(kh, kw, cin, cout):
        std = (2.0 / (kh * kw * cin)) ** 0.5
        return std * jax.random.normal(nk(), (kh, kw, cin, cout), jnp.float32)   # HWIO

    params = {"conv1_w": init_conv(7, 7, 3, 64), "bn1": init_bn(64)}
    layers = []
    in_ch = 64
    for nblocks, width, stride in [(3, 64, 1), (4, 128, 2), (6, 256, 2), (3, 512, 2)]:
        blocks = []
        for b in range(nblocks):
            s = stride if b == 0 else 1
            out_ch = width * 4
            blk = {"c1_w": init_conv(1, 1, in_ch, width), "bn1": init_bn(width),
                   "c2_w": init_conv(3, 3, width, width), "bn2": init_bn(width),
                   "c3_w": init_conv(1, 1, width, out_ch), "bn3": init_bn(out_ch)}
            if s != 1 or in_ch != out_ch:
                blk["ds_w"] = init_conv(1, 1, in_ch, out_ch)
                blk["ds_bn"] = init_bn(out_ch)
            blocks.append(blk)
            in_ch = out_ch
        layers.append(blocks)
    params["layers"] = layers
    params["embed_w"] = ((2.0 / (2048 + embed_size)) ** 0.5
                         * jax.random.normal(nk(), (2048, embed_size), jnp.float32))
    params["embed_b"] = 0.01 * jnp.ones((embed_size,), jnp.float32)
    params["bn1d"] = init_bn(embed_size)
    return params


# ---------------------------------------------------------------------------
# Pure-JAX reference (same math, lax.conv) for correctness check.
# ---------------------------------------------------------------------------
def _ref_bn(x, p, eps=1e-5):
    s = p["gamma"] / jnp.sqrt(p["var"] + eps)
    return x * s + (p["beta"] - p["mean"] * s)


def ref_forward(images, params):
    def conv(x, w, s, p):
        return lax.conv_general_dilated(
            x, w, (s, s), [(p, p), (p, p)],
            dimension_numbers=("NHWC", "HWIO", "NHWC"),
            precision=lax.Precision.HIGHEST)

    x = jnp.transpose(images, (0, 2, 3, 1)).astype(jnp.float32)
    x = jax.nn.relu(_ref_bn(conv(x, params["conv1_w"], 2, 3), params["bn1"]))
    x = lax.reduce_window(x, -jnp.inf, lax.max, (1, 3, 3, 1), (1, 2, 2, 1),
                          [(0, 0), (1, 1), (1, 1), (0, 0)])
    strides = [1, 2, 2, 2]
    for li, blocks in enumerate(params["layers"]):
        for bi, blk in enumerate(blocks):
            s = strides[li] if bi == 0 else 1
            ident = x
            out = jax.nn.relu(_ref_bn(conv(x, blk["c1_w"], 1, 0), blk["bn1"]))
            out = jax.nn.relu(_ref_bn(conv(out, blk["c2_w"], s, 1), blk["bn2"]))
            out = _ref_bn(conv(out, blk["c3_w"], 1, 0), blk["bn3"])
            if "ds_w" in blk:
                ident = _ref_bn(conv(x, blk["ds_w"], s, 0), blk["ds_bn"])
            x = jax.nn.relu(out + ident)
    feats = jnp.mean(x, axis=(1, 2))
    y = feats @ params["embed_w"] + params["embed_b"]
    return _ref_bn(y, params["bn1d"])


if __name__ == "__main__":
    B, IMG, EMBED = 2, 64, 256

    key = jax.random.PRNGKey(0)
    k_par, k_img = jax.random.split(key)
    params = init_params(k_par, EMBED)
    images = jax.random.normal(k_img, (B, 3, IMG, IMG), jnp.float32)

    # f32 end-to-end for the numeric check; pass compute_dtype=jnp.bfloat16 for ~2x MXU
    # throughput / half the weight traffic in production (loosen tolerance accordingly).
    feats = encoder_cnn_forward(images, params, compute_dtype=jnp.float32)
    feats = jax.block_until_ready(feats)

    ref = jax.block_until_ready(jax.jit(ref_forward)(images, params))
    assert feats.shape == (B, EMBED), feats.shape
    err = float(jnp.max(jnp.abs(feats - ref)))
    tol = 1e-2 * float(jnp.max(jnp.abs(ref))) + 1e-3
    assert err <= tol, (err, tol)

    print("KERNEL_OK")
</pallas_src>

<mosaic_0001>
module attributes {stable_mosaic.version = 11 : i64} {
  func.func @_gemm_bn_kernel(%arg0: i32, %arg1: i32, %arg2: memref<512x256xf32, #tpu.memory_space<vmem>>, %arg3: memref<256x128xf32, #tpu.memory_space<vmem>>, %arg4: memref<1x128xf32, #tpu.memory_space<vmem>>, %arg5: memref<1x128xf32, #tpu.memory_space<vmem>>, %arg6: memref<512x128xf32, #tpu.memory_space<vmem>>) attributes {dimension_semantics = [#tpu.dimension_semantics<parallel>, #tpu.dimension_semantics<parallel>], iteration_bounds = array<i64: 4, 1>, scalar_prefetch = 0 : i64, scratch_operands = 0 : i64, tpu.core_type = #tpu.core_type<tc>, window_params = [{transform_indices = @transform_0, window_bounds = array<i64: 512, 256>}, {transform_indices = @transform_1, window_bounds = array<i64: 256, 128>}, {transform_indices = @transform_2, window_bounds = array<i64: 1, 128>}, {transform_indices = @transform_3, window_bounds = array<i64: 1, 128>}, {transform_indices = @transform_4, window_bounds = array<i64: 512, 128>}]} {
    %c0 = arith.constant 0 : index
    %c0_0 = arith.constant 0 : index
    %0 = vector.load %arg2[%c0, %c0_0] : memref<512x256xf32, #tpu.memory_space<vmem>>, vector<512x256xf32>
    %c0_1 = arith.constant 0 : index
    %c0_2 = arith.constant 0 : index
    %1 = vector.load %arg3[%c0_1, %c0_2] : memref<256x128xf32, #tpu.memory_space<vmem>>, vector<256x128xf32>
    %cst = arith.constant dense<0.000000e+00> : vector<512x128xf32>
    %2 = tpu.matmul %0, %1, %cst {dimension_numbers = #tpu.dot_dimension_numbers<[1], [0], [0], [1], [0, 0, 1, 1], [], []>} : vector<512x256xf32>, vector<256x128xf32>, vector<512x128xf32> -> vector<512x128xf32>
    %c0_3 = arith.constant 0 : index
    %c0_4 = arith.constant 0 : index
    %3 = vector.load %arg4[%c0_3, %c0_4] : memref<1x128xf32, #tpu.memory_space<vmem>>, vector<1x128xf32>
    %4 = vector.broadcast %3 : vector<1x128xf32> to vector<512x128xf32>
    %5 = arith.mulf %2, %4 : vector<512x128xf32>
    %c0_5 = arith.constant 0 : index
    %c0_6 = arith.constant 0 : index
    %6 = vector.load %arg5[%c0_5, %c0_6] : memref<1x128xf32, #tpu.memory_space<vmem>>, vector<1x128xf32>
    %7 = vector.broadcast %6 : vector<1x128xf32> to vector<512x128xf32>
    %8 = arith.addf %5, %7 : vector<512x128xf32>
    %cst_7 = arith.constant 0.000000e+00 : f32
    %9 = vector.broadcast %cst_7 : f32 to vector<512x128xf32>
    %10 = arith.maximumf %8, %9 : vector<512x128xf32>
    %c0_8 = arith.constant 0 : index
    %c0_9 = arith.constant 0 : index
    %11 = vector.load %arg6[%c0_8, %c0_9] : memref<512x128xf32, #tpu.memory_space<vmem>>, vector<512x128xf32>
    tpu.vector_store %arg6[%c0_8, %c0_9], %10 {strides = array<i32>} : memref<512x128xf32, #tpu.memory_space<vmem>>, vector<512x128xf32>,
    return
  }
  func.func @transform_0(%arg0: i32, %arg1: i32) -> (i32, i32) {
    %c0_i32 = arith.constant 0 : i32
    %c0_i32_0 = arith.constant 0 : i32
    return %arg0, %c0_i32 : i32, i32
  }
  func.func @transform_1(%arg0: i32, %arg1: i32) -> (i32, i32) {
    %c0_i32 = arith.constant 0 : i32
    %c0_i32_0 = arith.constant 0 : i32
    return %c0_i32, %arg1 : i32, i32
  }
  func.func @transform_2(%arg0: i32, %arg1: i32) -> (i32, i32) {
    %c0_i32 = arith.constant 0 : i32
    %c0_i32_0 = arith.constant 0 : i32
    return %c0_i32, %arg1 : i32, i32
  }
  func.func @transform_3(%arg0: i32, %arg1: i32) -> (i32, i32) {
    %c0_i32 = arith.constant 0 : i32
    %c0_i32_0 = arith.constant 0 : i32
    return %c0_i32, %arg1 : i32, i32
  }
  func.func @transform_4(%arg0: i32, %arg1: i32) -> (i32, i32) {
    %c0_i32 = arith.constant 0 : i32
    return %arg0, %arg1 : i32, i32
  }
}

</mosaic_0001>

<bundles_post_ra>
// kernel: tpu_custom_call.1
= control target key start
LH: loop header
LB: loop body
LE: loop exit
PB: predicated region body
PF: predicated region fallthrough
CT: control target
= control target key end

     0   :  { %9 = vsyncpa [#allocation3], 0  ;;  %s2333_s0 = inlined_call_operand.hbm [shape: f32[2048,256], index: 0, kind: input, shape index: {}]   ;;  %s2334_s1 = inlined_call_operand.hbm [shape: f32[256,128], index: 1, kind: input, shape index: {}]   ;;  %s2335_s2 = inlined_call_operand.hbm [shape: f32[1,128], index: 2, kind: input, shape index: {}]   ;;  %s2336_s3 = inlined_call_operand.hbm [shape: f32[1,128], index: 3, kind: input, shape index: {}]   ;;  %s2337_s4 = inlined_call_operand.hbm [shape: f32[2048,128], index: 4, kind: output, shape index: {}]  }
   0x1   :  { %11 = vsyncpa [#allocation3 + $0x1], 0 }
   0x2   :  { %12 = vsyncpa [#allocation6], 0 }
   0x3   :  { %13 = vsyncpa [#allocation9], 0 }
   0x4   :  { %14 = vsyncpa [#allocation4], 0 }
   0x5   :  { %16 = vsyncpa [#allocation4 + $0x1], 0  ;;  %s1692_s15 = smov 0   ;;  %s1694_s16 = smov 0  }
   0x6   :  { %s1696_s17 = smov 0   ;;  %s1698_s18 = smov 0  }
   0x7   :  { %s1700_s19 = smov 0   ;;  %s1702_s20 = smov 0  }
   0x8 LB: > { %s1242_s21 = sadd.s32 4294967295, %s1653_s20   ;;  %s1243_s22 = sadd.s32 4294967294, %s1653_s20   ;;  %s1653_s20 = sphi %s1702_s20, %s22_s20   ;;  %s1649_s19 = sphi %s1700_s19, %s2363_s19   ;;  %s1645_s18 = sphi %s1698_s18, %s2362_s18   ;;  %s1641_s17 = sphi %s1696_s17, %s2361_s17   ;;  %s1637_s16 = sphi %s1694_s16, %s2360_s16   ;;  %s1633_s15 = sphi %s1692_s15, %s2359_s15  }
   0x9   : > { %p54_p0 = scmp.ne.s32.totalorder %s1637_s16, %s1633_s15  ;;  %p1726_p1 = scmp.eq.s32.totalorder %s1242_s21, 0 }
   0xa   : > { %p1730_p2 = scmp.eq.s32.totalorder %s1242_s21, 3  ;;  %p164_p3 = scmp.eq.s32.totalorder %s1243_s22, 3 }
   0xb   : > { %s2343_s23 = scalar_select %p1726_p1, 1, 0 }
   0xc   : > { %s2344_s24 = scalar_select %p1730_p2, 1, 0 }
   0xd   : > { %p1736_p4 = por %p1726_p1, %p54_p0  ;;  %p1244_p5 = scmp.ge.s32.totalorder %s1653_s20, 1 }
   0xe   : > { %p1741_p6 = por %p164_p3, %p54_p0  ;;  %p171_p7 = scmp.lt.s32.totalorder %s1653_s20, 5 }
   0xf   : > { %s2345_s25 = scalar_select %p1736_p4, 1, 0 }
  0x10   : > { %s2346_s26 = scalar_select %p1741_p6, 1, 0 }
  0x11   : > { %p1746_p8 = pnand %p1244_p5, %p171_p7  ;;  %s1655_s28 = smov [#allocation5]  }
  0x12   : > { %2347 = sst [smem:[#allocation15_spill]] %s2346_s26  ;;  %s185_s29 = sshll.u32 %s1655_s28, 4  ;;  %s1750_s29 = int_to_ptr.vmem [resolvable:$true] %s185_s29 }
  0x13   : > { %s2348_s27 = scalar_select %p1746_p8, 1, 0 }
  0x14   : > { %p1365_p9 = pneg %p1746_p8  ;;  %s1656_s5 = smov [#allocation7]  }
  0x15   : > { %s201_s6 = sshll.u32 %s1656_s5, 4  ;;  %s1657_s7 = smov [#allocation8]   ;;  %s1760_s6 = int_to_ptr.vmem [resolvable:$true] %s201_s6 }
  0x16   : > { %p1756_p10 = pnand %p1365_p9, %p1726_p1  ;;  %s1762_s8 = sshll.u32 %s1657_s7, 4  ;;  %s215_s8 = int_to_ptr.vmem [resolvable:$true] %s1762_s8 }
  0x17   : > { %s1449_s11 = scalar_lea.hbm %s2334_s1, 4096 }
  0x18   : > { %p1450_p11 = scmp.ne.s32.totalorder %s2334_s1, %s1449_s11  ;;  %p1772_p12 = pneg %p1756_p10 }
  0x19   : > { %p1456_p3 = scmp.lt.u32.totalorder %s1449_s11, %s2334_s1 }
  0x1a   : > { %p1452_p13 = pnand %p1772_p12, %p1450_p11 }
  0x1c   : > { %p1453_p0 = pneg %p1452_p13 }
  0x1e   : > { %p1458_p5 = pnand %p1456_p3, %p1453_p0 }
  0x20   : > { %1461 = shalt.err (!%p1458_p5)
}
  0x21   : > { %s1462_s28 = scalar_lea.vmem %s1750_s29, 4096  ;;  %p1470_p1 = scmp.lt.s32.totalorder %s1750_s29, %s1750_s29 }
  0x22   : > { %p1463_p7 = scmp.ne.s32.totalorder %s1750_s29, %s1462_s28  ;;  %p1471_p4 = scmp.lt.s32.totalorder %s1462_s28, %s1462_s28 }
  0x24   : > { %p1465_p9 = pnand %p1463_p7, %p1772_p12  ;;  %p1472_p11 = por %p1471_p4, %p1470_p1 }
  0x26   : > { %p1466_p6 = pneg %p1465_p9 }
  0x28   : > { %p1473_p13 = pnand %p1472_p11, %p1466_p6 }
  0x2a   : > { %1476 = shalt.err (!%p1473_p13)
}
  0x2b   : > { %s1658_s5 = smov 128   ;;  %s1659_s7 = smov 8  }
  0x2c   : > { %1368 = dma.hbm_to_vmem [thread:$0]  (!%p1756_p10), %s2334_s1, 4096, %s1750_s29, [#allocation6], %s1658_s5, %s1658_s5, %s1659_s7  }
  0x2d   : > { %s1477_s13 = scalar_lea.hbm %s2335_s2, 16 }
  0x2e   : > { %p1478_p1 = scmp.ne.s32.totalorder %s2335_s2, %s1477_s13  ;;  %p1484_p0 = scmp.lt.u32.totalorder %s1477_s13, %s2335_s2 }
  0x30   : > { %p1480_p4 = pnand %p1478_p1, %p1772_p12 }
  0x32   : > { %p1481_p6 = pneg %p1480_p4 }
  0x34   : > { %p1486_p3 = pnand %p1484_p0, %p1481_p6 }
  0x36   : > { %1489 = shalt.err (!%p1486_p3)
}
  0x37   : > { %s1490_s29 = scalar_lea.vmem %s1760_s6, 16  ;;  %s1497_s5 = scalar_lea.vmem %s1760_s6, 32 }
  0x38   : > { %p1491_p5 = scmp.ne.s32.totalorder %s1760_s6, %s1490_s29  ;;  %p1498_p11 = scmp.lt.s32.totalorder %s1760_s6, %s1760_s6 }
  0x39   : > { %p1499_p13 = scmp.lt.s32.totalorder %s1497_s5, %s1490_s29 }
  0x3a   : > { %p1493_p7 = pnand %p1491_p5, %p1772_p12 }
  0x3b   : > { %p1500_p1 = por %p1499_p13, %p1498_p11 }
  0x3c   : > { %p1494_p9 = pneg %p1493_p7 }
  0x3e   : > { %p1501_p4 = pnand %p1500_p1, %p1494_p9 }
  0x40   : > { %1504 = shalt.err (!%p1501_p4)
}
  0x41   : > { %1371 = dma.hbm_to_vmem [thread:$0]  (!%p1756_p10), %s2335_s2, 16, %s1760_s6, [#allocation6]  }
  0x42   : > { %s1505_s11 = scalar_lea.hbm %s2336_s3, 16 }
  0x43   : > { %p1506_p6 = scmp.ne.s32.totalorder %s2336_s3, %s1505_s11  ;;  %p1512_p5 = scmp.lt.u32.totalorder %s1505_s11, %s2336_s3 }
  0x45   : > { %p1508_p0 = pnand %p1506_p6, %p1772_p12 }
  0x47   : > { %p1509_p3 = pneg %p1508_p0 }
  0x49   : > { %p1514_p7 = pnand %p1512_p5, %p1509_p3 }
  0x4b   : > { %1517 = shalt.err (!%p1514_p7)
}
  0x4c   : > { %s1518_s28 = scalar_lea.vmem %s215_s8, 16  ;;  %s1525_s6 = scalar_lea.vmem %s215_s8, 32 }
  0x4d   : > { %p1519_p9 = scmp.ne.s32.totalorder %s215_s8, %s1518_s28  ;;  %p1526_p1 = scmp.lt.s32.totalorder %s215_s8, %s215_s8 }
  0x4e   : > { %p1527_p4 = scmp.lt.s32.totalorder %s1525_s6, %s1518_s28 }
  0x4f   : > { %p1521_p11 = pnand %p1519_p9, %p1772_p12 }
  0x50   : > { %p1528_p8 = por %p1527_p4, %p1526_p1 }
  0x51   : > { %p1522_p13 = pneg %p1521_p11 }
  0x53   : > { %p1529_p2 = pnand %p1528_p8, %p1522_p13 }
  0x55   : > { %1532 = shalt.err (!%p1529_p2)
}
  0x56   : > { %1374 = dma.hbm_to_vmem [thread:$0]  (!%p1756_p10), %s2336_s3, 16, %s215_s8, [#allocation9]  }
  0x57   : > { %s41_s14 = sadd.s32 1, %s1641_s17  ;;  %s34_s26 = sadd.s32 1, %s1649_s19 }
  0x58   : > { %p48_p2 = scmp.ne.s32.totalorder %s1641_s17, %s1637_s16  ;;  %p36_p8 = scmp.ge.s32.totalorder %s34_s26, 4 }
  0x59   : > { %p49_p12 = scmp.eq.s32.totalorder %s1653_s20, 0  ;;  %p2351_p6 = scmp.ne.s32.totalorder %s2344_s24, 0 }
  0x5a   : > { %p1386_p3 = scmp.lt.s32.totalorder %s1653_s20, 4  ;;  %s2365_s26 = smov (%p36_p8, %s34_s26), 0 }
  0x5b   : > { %p1843_p0 = por %p2351_p6, %p48_p2  ;;  %p50_p5 = por %p49_p12, %p48_p2 }
  0x5c   : > { %s225_s7 = sand.u32 1, %s1641_s17   ;;  %s38_s9 = ssub.s32 %s1649_s19, %s2365_s26 }
  0x5d   : > { %p39_p7 = scmp.eq.s32.totalorder %s38_s9, 0  ;;  %s1249_s8 = sshll.u32 %s225_s7, 10 }
  0x5e   : > { %s1267_s10 = sshll.u32 %s1649_s19, 14  ;;  %s229_s21 = scalar_lea.vmem [#allocation2], %s1249_s8 }
  0x5f   : > { %s1855_s11 = scalar_select %p39_p7, %s1641_s17, %s41_s14  }
  0x60   : > { %s1860_s24 = scalar_lea.hbm %s2333_s0, %s1267_s10  ;;  %s237_s22 = sshll.u32 %s229_s21, 4  ;;  %s1862_s22 = int_to_ptr.vmem [resolvable:$true] %s237_s22 }
  0x61   : > { %p1866_p10 = pnand %p1386_p3, %p50_p5  ;;  %s1870_s6 = scalar_lea.sflag [#allocation3], %s225_s7 }
  0x62   : > { %s1533_s29 = scalar_lea.hbm %s1860_s24, 16384  ;;  %s1538_s9 = scalar_lea.hbm %s2333_s0, 65536 }
  0x63   : > { %p1534_p9 = scmp.ne.s32.totalorder %s1860_s24, %s1533_s29  ;;  %p1535_p11 = pneg %p1866_p10 }
  0x64   : > { %p1539_p4 = scmp.lt.u32.totalorder %s1860_s24, %s2333_s0  ;;  %p1540_p2 = scmp.lt.u32.totalorder %s1538_s9, %s1533_s29 }
  0x65   : > { %p1536_p13 = pnand %p1535_p11, %p1534_p9  ;;  %p1542_p12 = scmp.lt.u32.totalorder %s1533_s29, %s1860_s24 }
  0x66   : > { %p1541_p8 = por %p1540_p2, %p1539_p4 }
  0x67   : > { %p1537_p1 = pneg %p1536_p13 }
  0x68   : > { %p1543_p6 = por %p1542_p12, %p1541_p8 }
  0x6a   : > { %p1544_p3 = pnand %p1543_p6, %p1537_p1 }
  0x6c   : > { %1547 = shalt.err (!%p1544_p3)
}
  0x6d   : > { %s1548_s7 = scalar_lea.vmem %s1862_s22, 16384  ;;  %s1660_s12 = smov [#allocation2]  }
  0x6e   : > { %p1549_p5 = scmp.ne.s32.totalorder %s1862_s22, %s1548_s7  ;;  %s1553_s13 = sshll.u32 %s1660_s12, 4  ;;  %s1554_s13 = int_to_ptr.vmem [resolvable:$false] %s1553_s13 }
  0x6f   : > { %s1555_s21 = scalar_lea.vmem %s1554_s13, 32768  ;;  %p1556_p13 = scmp.lt.s32.totalorder %s1862_s22, %s1554_s13 }
  0x70   : > { %p1551_p7 = pnand %p1549_p5, %p1535_p11  ;;  %p1557_p4 = scmp.lt.s32.totalorder %s1555_s21, %s1548_s7 }
  0x72   : > { %p1552_p9 = pneg %p1551_p7  ;;  %p1558_p2 = por %p1557_p4, %p1556_p13 }
  0x74   : > { %p1559_p8 = pnand %p1558_p2, %p1552_p9 }
  0x76   : > { %1562 = shalt.err (!%p1559_p8)
}
  0x77   : > { %s1661_s29 = smov 256   ;;  %s1662_s5 = smov 16  }
  0x78   : > { %1378 = dma.hbm_to_vmem [thread:$0]  (!%p1866_p10), %s1860_s24, 16384, %s1862_s22, %s1870_s6, %s1661_s29, %s1661_s29, %s1662_s5  }
  0x79   : > { %p2354_p11 = scmp.ne.s32.totalorder %s2348_s27, 0 }
  0x7a   : > { %s1901_s14 = sand.u32 (!%p2354_p11), 1, %s1637_s16   ;;  %p2355_p1 = scmp.ne.s32.totalorder (!%p2354_p11), %s2345_s25, 0 }
  0x7b   : > { %249 = sbr.rel (%p2354_p11) target bundleno = 559 (0x22f), region = 36  ;;  %s1254_s9 = sshll.u32 (!%p2354_p11), %s1901_s14, 10 }
  0x7c   : > { %s252_s8 = scalar_lea.sflag (!%p2354_p11), [#allocation3], %s1901_s14  ;;  %s1905_s10 = scalar_lea.vmem (!%p2354_p11), [#allocation2], %s1254_s9 }
  0x82   : > { %1616 = dma.done.wait (%p2355_p1), %s252_s8, 16384  }
  0x83   : > { %1618 = vsyncadd (%p2355_p1), %s252_s8, 4294950912  ;;  %p2356_p10 = scmp.ne.s32.totalorder %s2343_s23, 0 }
  0x85   : > { %1620 = dma.done.wait (%p2356_p10), [#allocation6], 4112  }
  0x86   : > { %1622 = vsyncadd (%p2356_p10), [#allocation6], 4294963184 }
  0x87   : > { %1624 = dma.done.wait (%p2356_p10), [#allocation9], 16  }
  0x88   : > { %1626 = vsyncadd (%p2356_p10), [#allocation9], 4294967280  ;;  %v1663_v0 = vmov 0.0|0.0   ;;  %v422_v1 = vld [vmem:[#allocation5] sm:$0xff]  ;;  %v423_v2 = vld [vmem:[#allocation5 + $0x8] sm:$0xff]  ;;  %s1258_s23 = sshll.u32 %s1901_s14, 9 }
  0x89   : > { %1269 = vmatprep.subr.bf16.mxu0 %v1663_v0  ;;  %1317 = vmatprep.subr.bf16.mxu1 %v1663_v0  ;;  %v424_v3 = vld [vmem:[#allocation5 + $0x10] sm:$0xff]  ;;  %v1270_v4 = vpack.c.bf16 %v423_v2, %v422_v1  ;;  %v425_v5 = vld [vmem:[#allocation5 + $0x18] sm:$0xff]  ;;  %v426_v7 = vld [vmem:[#allocation5 + $0x20] sm:$0xff]  ;;  %s2090_s25 = scalar_lea.vmem [#allocation10], %s1258_s23  ;;  %s1268_s27 = sshll.u32 %s1645_s18, 13 }
  0x8a   : > { %v1273_v6 = vpack.c.bf16 %v425_v5, %v424_v3  ;;  %v427_v8 = vld [vmem:[#allocation5 + $0x28] sm:$0xff]  ;;  %v428_v10 = vld [vmem:[#allocation5 + $0x30] sm:$0xff]  ;;  %v429_v11 = vld [vmem:[#allocation5 + $0x38] sm:$0xff]  ;;  %s1124_s24 = sshll.u32 %s2090_s25, 4  ;;  %s2281_s6 = scalar_lea.hbm %s2337_s4, %s1268_s27  ;;  %s2283_s24 = int_to_ptr.vmem [resolvable:$true] %s1124_s24 }
  0x8b   : > { %1271 = vmatpush1.bf16.msra.mxu0 %v1270_v4  ;;  %1333 = vmatpush1.bf16.msra.mxu1 %v1270_v4  ;;  %v1276_v9 = vpack.c.bf16 %v427_v8, %v426_v7  ;;  %v295_v12 = vld [vmem:[%s1905_s10 + $0x8] sm:$0xff]  ;;  %v1279_v13 = vpack.c.bf16 %v429_v11, %v428_v10  ;;  %v430_v15 = vld [vmem:[#allocation5 + $0x40] sm:$0xff]  ;;  %v432_v18 = vld [vmem:[#allocation5 + $0x50] sm:$0xff]  ;;  %s1110_s18 = scalar_lea.sflag [#allocation4], %s1901_s14  ;;  %s1563_s7 = scalar_lea.vmem %s2283_s24, 8192 }
  0x8c   : > { %1272 = vmatprep.subr.bf16.mxu0 %v1663_v0  ;;  %1318 = vmatprep.subr.bf16.mxu1 %v1663_v0  ;;  %v359_v14 = vld [vmem:[%s1905_s10 + $0x208] sm:$0xff]  ;;  %v433_v19 = vld [vmem:[#allocation5 + $0x58] sm:$0xff]  ;;  %v434_v21 = vld [vmem:[#allocation5 + $0x60] sm:$0xff]  ;;  %p1564_p12 = scmp.ne.s32.totalorder %s2283_s24, %s1563_s7  ;;  %s1664_s12 = smov [#allocation10]  }
  0x8d   : > { %v431_v16 = vld [vmem:[#allocation5 + $0x48] sm:$0xff]  ;;  %518 = vmatprep.mubr.f32.mxu0 %v295_v12  ;;  %678 = vmatprep.mubr.f32.mxu1 %v359_v14  ;;  %v1285_v20 = vpack.c.bf16 %v433_v19, %v432_v18  ;;  %v436_v24 = vld [vmem:[#allocation5 + $0x70] sm:$0xff]  ;;  %v437_v25 = vld [vmem:[#allocation5 + $0x78] sm:$0xff]  ;;  %s1567_s13 = sshll.u32 %s1664_s12, 4  ;;  %s1568_s13 = int_to_ptr.vmem [resolvable:$false] %s1567_s13 }
  0x8e   : > { %v1282_v17 = vpack.c.bf16 %v431_v16, %v430_v15  ;;  %v435_v22 = vld [vmem:[#allocation5 + $0x68] sm:$0xff]  ;;  %v1291_v26 = vpack.c.bf16 %v437_v25, %v436_v24  ;;  %v438_v27 = vld [vmem:[#allocation5 + $0x80] sm:$0xff]  ;;  %v440_v30 = vld [vmem:[#allocation5 + $0x90] sm:$0xff]  ;;  %p1565_p6 = pnand %p1564_p12, %p1843_p0  ;;  %s1569_s21 = scalar_lea.vmem %s1568_s13, 16384 }
  0x8f   : > { %1274 = vmatpush1.bf16.msra.mxu0 %v1273_v6  ;;  %1334 = vmatpush1.bf16.msra.mxu1 %v1273_v6  ;;  %v1288_v23 = vpack.c.bf16 %v435_v22, %v434_v21  ;;  %v439_v28 = vld [vmem:[#allocation5 + $0x88] sm:$0xff]  ;;  %v441_v31 = vld [vmem:[#allocation5 + $0x98] sm:$0xff]  ;;  %v442_v33 = vld [vmem:[#allocation5 + $0xa0] sm:$0xff]  ;;  %p1570_p5 = scmp.lt.s32.totalorder %s2283_s24, %s1568_s13  ;;  %p1571_p7 = scmp.lt.s32.totalorder %s1569_s21, %s1563_s7 }
  0x90   : > { %1275 = vmatprep.subr.bf16.mxu0 %v1663_v0  ;;  %1319 = vmatprep.subr.bf16.mxu1 %v1663_v0  ;;  %v1294_v29 = vpack.c.bf16 %v439_v28, %v438_v27  ;;  %v1297_v32 = vpack.c.bf16 %v441_v31, %v440_v30  ;;  %v443_v34 = vld [vmem:[#allocation5 + $0xa8] sm:$0xff]  ;;  %v444_v36 = vld [vmem:[#allocation5 + $0xb0] sm:$0xff]  ;;  %v445_v37 = vld [vmem:[#allocation5 + $0xb8] sm:$0xff]  ;;  %p1566_p3 = pneg %p1565_p6 }
  0x91   : > { %v1300_v35 = vpack.c.bf16 %v443_v34, %v442_v33  ;;  %v1303_v38 = vpack.c.bf16 %v445_v37, %v444_v36  ;;  %v446_v39 = vld [vmem:[#allocation5 + $0xc0] sm:$0xff]  ;;  %v447_v40 = vld [vmem:[#allocation5 + $0xc8] sm:$0xff]  ;;  %v448_v42 = vld [vmem:[#allocation5 + $0xd0] sm:$0xff]  ;;  %p1572_p9 = por %p1571_p7, %p1570_p5 }
  0x92   : > { %v1306_v41 = vpack.c.bf16 %v447_v40, %v446_v39  ;;  %v449_v43 = vld [vmem:[#allocation5 + $0xd8] sm:$0xff]  ;;  %v450_v45 = vld [vmem:[#allocation5 + $0xe0] sm:$0xff]  ;;  %v451_v46 = vld [vmem:[#allocation5 + $0xe8] sm:$0xff] }
  0x93   : > { %1277 = vmatpush1.bf16.msra.mxu0 %v1276_v9  ;;  %1335 = vmatpush1.bf16.msra.mxu1 %v1276_v9  ;;  %v1309_v44 = vpack.c.bf16 %v449_v43, %v448_v42  ;;  %v1312_v47 = vpack.c.bf16 %v451_v46, %v450_v45  ;;  %v452_v48 = vld [vmem:[#allocation5 + $0xf0] sm:$0xff]  ;;  %v453_v49 = vld [vmem:[#allocation5 + $0xf8] sm:$0xff]  ;;  %v294_v51 = vld [vmem:[%s1905_s10] sm:$0xff]  ;;  %p1573_p13 = pnand %p1572_p9, %p1566_p3 }
  0x94   : > { %1278 = vmatprep.subr.bf16.mxu0 %v1663_v0  ;;  %1320 = vmatprep.subr.bf16.mxu1 %v1663_v0  ;;  %v1315_v50 = vpack.c.bf16 %v453_v49, %v452_v48  ;;  %v358_v52 = vld [vmem:[%s1905_s10 + $0x200] sm:$0xff]  ;;  %v297_v53 = vld [vmem:[%s1905_s10 + $0x18] sm:$0xff]  ;;  %v296_v55 = vld [vmem:[%s1905_s10 + $0x10] sm:$0xff] }
  0x95   : > { %v361_v54 = vld [vmem:[%s1905_s10 + $0x218] sm:$0xff]  ;;  %v360_v56 = vld [vmem:[%s1905_s10 + $0x210] sm:$0xff]  ;;  %v299_v57 = vld [vmem:[%s1905_s10 + $0x28] sm:$0xff] }
  0x96   : > { %v363_v58 = vld [vmem:[%s1905_s10 + $0x228] sm:$0xff]  ;;  %v298_v59 = vld [vmem:[%s1905_s10 + $0x20] sm:$0xff]  ;;  %v301_v61 = vld [vmem:[%s1905_s10 + $0x38] sm:$0xff] }
  0x97   : > { %1280 = vmatpush1.bf16.msra.mxu0 %v1279_v13  ;;  %1336 = vmatpush1.bf16.msra.mxu1 %v1279_v13  ;;  %v362_v60 = vld [vmem:[%s1905_s10 + $0x220] sm:$0xff]  ;;  %v365_v62 = vld [vmem:[%s1905_s10 + $0x238] sm:$0xff]  ;;  %v300_v63 = vld [vmem:[%s1905_s10 + $0x30] sm:$0xff] }
  0x98   : > { %1281 = vmatprep.subr.bf16.mxu0 %v1663_v0  ;;  %1321 = vmatprep.subr.bf16.mxu1 %v1663_v0  ;;  %v303_v1 = vld [vmem:[%s1905_s10 + $0x48] sm:$0xff]  ;;  %v302_v3 = vld [vmem:[%s1905_s10 + $0x40] sm:$0xff]  ;;  %v305_v5 = vld [vmem:[%s1905_s10 + $0x58] sm:$0xff] }
  0x99   : > { %v367_v2 = vld [vmem:[%s1905_s10 + $0x248] sm:$0xff]  ;;  %v366_v4 = vld [vmem:[%s1905_s10 + $0x240] sm:$0xff]  ;;  %v369_v6 = vld [vmem:[%s1905_s10 + $0x258] sm:$0xff] }
  0x9a   : > { %v304_v7 = vld [vmem:[%s1905_s10 + $0x50] sm:$0xff]  ;;  %v307_v9 = vld [vmem:[%s1905_s10 + $0x68] sm:$0xff]  ;;  %v306_v11 = vld [vmem:[%s1905_s10 + $0x60] sm:$0xff] }
  0x9b   : > { %1283 = vmatpush1.bf16.msra.mxu0 %v1282_v17  ;;  %1337 = vmatpush1.bf16.msra.mxu1 %v1282_v17  ;;  %v368_v8 = vld [vmem:[%s1905_s10 + $0x250] sm:$0xff]  ;;  %v371_v10 = vld [vmem:[%s1905_s10 + $0x268] sm:$0xff]  ;;  %v370_v12 = vld [vmem:[%s1905_s10 + $0x260] sm:$0xff] }
  0x9c   : > { %1284 = vmatprep.subr.bf16.mxu0 %v1663_v0  ;;  %1322 = vmatprep.subr.bf16.mxu1 %v1663_v0  ;;  %v309_v13 = vld [vmem:[%s1905_s10 + $0x78] sm:$0xff]  ;;  %v308_v15 = vld [vmem:[%s1905_s10 + $0x70] sm:$0xff]  ;;  %v311_v17 = vld [vmem:[%s1905_s10 + $0x88] sm:$0xff] }
  0x9d   : > { %v373_v14 = vld [vmem:[%s1905_s10 + $0x278] sm:$0xff]  ;;  %v372_v16 = vld [vmem:[%s1905_s10 + $0x270] sm:$0xff]  ;;  %v375_v18 = vld [vmem:[%s1905_s10 + $0x288] sm:$0xff] }
  0x9e   : > { %v310_v19 = vld [vmem:[%s1905_s10 + $0x80] sm:$0xff]  ;;  %v313_v21 = vld [vmem:[%s1905_s10 + $0x98] sm:$0xff]  ;;  %v376_v24 = vld [vmem:[%s1905_s10 + $0x290] sm:$0xff] }
  0x9f   : > { %1286 = vmatpush1.bf16.msra.mxu0 %v1285_v20  ;;  %1338 = vmatpush1.bf16.msra.mxu1 %v1285_v20  ;;  %v374_v20 = vld [vmem:[%s1905_s10 + $0x280] sm:$0xff]  ;;  %v377_v22 = vld [vmem:[%s1905_s10 + $0x298] sm:$0xff]  ;;  %v315_v25 = vld [vmem:[%s1905_s10 + $0xa8] sm:$0xff] }
  0xa0   : > { %1287 = vmatprep.subr.bf16.mxu0 %v1663_v0  ;;  %1323 = vmatprep.subr.bf16.mxu1 %v1663_v0  ;;  %v314_v27 = vld [vmem:[%s1905_s10 + $0xa0] sm:$0xff]  ;;  %v381_v30 = vld [vmem:[%s1905_s10 + $0x2b8] sm:$0xff]  ;;  %v316_v31 = vld [vmem:[%s1905_s10 + $0xb0] sm:$0xff] }
  0xa1   : > { %v378_v28 = vld [vmem:[%s1905_s10 + $0x2a0] sm:$0xff]  ;;  %v319_v33 = vld [vmem:[%s1905_s10 + $0xc8] sm:$0xff]  ;;  %v321_v37 = vld [vmem:[%s1905_s10 + $0xd8] sm:$0xff] }
  0xa2   : > { %v383_v34 = vld [vmem:[%s1905_s10 + $0x2c8] sm:$0xff]  ;;  %v382_v36 = vld [vmem:[%s1905_s10 + $0x2c0] sm:$0xff]  ;;  %v320_v39 = vld [vmem:[%s1905_s10 + $0xd0] sm:$0xff] }
  0xa3   : > { %1289 = vmatpush1.bf16.msra.mxu0 %v1288_v23  ;;  %1339 = vmatpush1.bf16.msra.mxu1 %v1288_v23  ;;  %v312_v23 = vld [vmem:[%s1905_s10 + $0x90] sm:$0xff]  ;;  %v387_v42 = vld [vmem:[%s1905_s10 + $0x2e8] sm:$0xff]  ;;  %v322_v43 = vld [vmem:[%s1905_s10 + $0xe0] sm:$0xff] }
  0xa4   : > { %1290 = vmatprep.subr.bf16.mxu0 %v1663_v0  ;;  %1324 = vmatprep.subr.bf16.mxu1 %v1663_v0  ;;  %v384_v40 = vld [vmem:[%s1905_s10 + $0x2d0] sm:$0xff]  ;;  %v325_v45 = vld [vmem:[%s1905_s10 + $0xf8] sm:$0xff]  ;;  %v327_v49 = vld [vmem:[%s1905_s10 + $0x108] sm:$0xff] }
  0xa5   : > { %v389_v46 = vld [vmem:[%s1905_s10 + $0x2f8] sm:$0xff]  ;;  %v388_v48 = vld [vmem:[%s1905_s10 + $0x2f0] sm:$0xff] }
  0xa7   : > { %1292 = vmatpush1.bf16.msra.mxu0 %v1291_v26  ;;  %1340 = vmatpush1.bf16.msra.mxu1 %v1291_v26  ;;  %v379_v26 = vld [vmem:[%s1905_s10 + $0x2a8] sm:$0xff] }
  0xa8   : > { %1293 = vmatprep.subr.bf16.mxu0 %v1663_v0  ;;  %1325 = vmatprep.subr.bf16.mxu1 %v1663_v0 }
  0xab   : > { %1295 = vmatpush1.bf16.msra.mxu0 %v1294_v29  ;;  %1341 = vmatpush1.bf16.msra.mxu1 %v1294_v29  ;;  %v317_v29 = vld [vmem:[%s1905_s10 + $0xb8] sm:$0xff] }
  0xac   : > { %1296 = vmatprep.subr.bf16.mxu0 %v1663_v0  ;;  %1326 = vmatprep.subr.bf16.mxu1 %v1663_v0 }
  0xaf   : > { %1298 = vmatpush1.bf16.msra.mxu0 %v1297_v32  ;;  %1342 = vmatpush1.bf16.msra.mxu1 %v1297_v32  ;;  %v380_v32 = vld [vmem:[%s1905_s10 + $0x2b0] sm:$0xff] }
  0xb0   : > { %1299 = vmatprep.subr.bf16.mxu0 %v1663_v0  ;;  %1327 = vmatprep.subr.bf16.mxu1 %v1663_v0 }
  0xb3   : > { %1301 = vmatpush1.bf16.msra.mxu0 %v1300_v35  ;;  %1343 = vmatpush1.bf16.msra.mxu1 %v1300_v35  ;;  %v318_v35 = vld [vmem:[%s1905_s10 + $0xc0] sm:$0xff] }
  0xb4   : > { %1302 = vmatprep.subr.bf16.mxu0 %v1663_v0  ;;  %1328 = vmatprep.subr.bf16.mxu1 %v1663_v0 }
  0xb7   : > { %1304 = vmatpush1.bf16.msra.mxu0 %v1303_v38  ;;  %1344 = vmatpush1.bf16.msra.mxu1 %v1303_v38  ;;  %v385_v38 = vld [vmem:[%s1905_s10 + $0x2d8] sm:$0xff] }
  0xb8   : > { %1305 = vmatprep.subr.bf16.mxu0 %v1663_v0  ;;  %1329 = vmatprep.subr.bf16.mxu1 %v1663_v0 }
  0xbb   : > { %1307 = vmatpush1.bf16.msra.mxu0 %v1306_v41  ;;  %1345 = vmatpush1.bf16.msra.mxu1 %v1306_v41  ;;  %v323_v41 = vld [vmem:[%s1905_s10 + $0xe8] sm:$0xff] }
  0xbc   : > { %1308 = vmatprep.subr.bf16.mxu0 %v1663_v0  ;;  %1330 = vmatprep.subr.bf16.mxu1 %v1663_v0 }
  0xbf   : > { %1310 = vmatpush1.bf16.msra.mxu0 %v1309_v44  ;;  %1346 = vmatpush1.bf16.msra.mxu1 %v1309_v44  ;;  %v386_v44 = vld [vmem:[%s1905_s10 + $0x2e0] sm:$0xff] }
  0xc0   : > { %1311 = vmatprep.subr.bf16.mxu0 %v1663_v0  ;;  %1331 = vmatprep.subr.bf16.mxu1 %v1663_v0 }
  0xc3   : > { %1313 = vmatpush1.bf16.msra.mxu0 %v1312_v47  ;;  %1347 = vmatpush1.bf16.msra.mxu1 %v1312_v47  ;;  %v324_v47 = vld [vmem:[%s1905_s10 + $0xf0] sm:$0xff] }
  0xc4   : > { %1314 = vmatprep.subr.bf16.mxu0 %v1663_v0  ;;  %1332 = vmatprep.subr.bf16.mxu1 %v1663_v0  ;;  %v364_v0 = vld [vmem:[%s1905_s10 + $0x230] sm:$0xff] }
  0xc7   : > { %1316 = vmatpush1.bf16.msra.mxu0 %v1315_v50  ;;  %1348 = vmatpush1.bf16.msra.mxu1 %v1315_v50  ;;  %v391_v50 = vld [vmem:[%s1905_s10 + $0x308] sm:$0xff] }
  0xca   : > { %519 = vmatmul.mubr.f32.vlgmr.msra.gmra.mrb[0].mxu0 %v294_v51  ;;  %679 = vmatmul.mubr.f32.vlgmr.msra.gmra.mrb[0].mxu1 %v358_v52  ;;  %v326_v51 = vld [vmem:[%s1905_s10 + $0x100] sm:$0xff] }
  0xcb   : > { %523 = vmatprep.mubr.f32.mxu0 %v297_v53  ;;  %683 = vmatprep.mubr.f32.mxu1 %v361_v54  ;;  %v390_v52 = vld [vmem:[%s1905_s10 + $0x300] sm:$0xff]  ;;  %v329_v53 = vld [vmem:[%s1905_s10 + $0x118] sm:$0xff] }
  0xcc   : > { %v393_v54 = vld [vmem:[%s1905_s10 + $0x318] sm:$0xff] }
  0xce   : > { %524 = vmatmul.mubr.f32.gmra.mrb[2].mxu0 %v296_v55  ;;  %684 = vmatmul.mubr.f32.gmra.mrb[2].mxu1 %v360_v56  ;;  %v328_v55 = vld [vmem:[%s1905_s10 + $0x110] sm:$0xff] }
  0xcf   : > { %528 = vmatprep.mubr.f32.mxu0 %v299_v57  ;;  %688 = vmatprep.mubr.f32.mxu1 %v363_v58  ;;  %v392_v56 = vld [vmem:[%s1905_s10 + $0x310] sm:$0xff]  ;;  %v331_v57 = vld [vmem:[%s1905_s10 + $0x128] sm:$0xff] }
  0xd0   : > { %v395_v58 = vld [vmem:[%s1905_s10 + $0x328] sm:$0xff] }
  0xd2   : > { %529 = vmatmul.mubr.f32.gmra.mrb[4].mxu0 %v298_v59  ;;  %689 = vmatmul.mubr.f32.gmra.mrb[4].mxu1 %v362_v60  ;;  %v330_v59 = vld [vmem:[%s1905_s10 + $0x120] sm:$0xff] }
  0xd3   : > { %533 = vmatprep.mubr.f32.mxu0 %v301_v61  ;;  %693 = vmatprep.mubr.f32.mxu1 %v365_v62  ;;  %v394_v60 = vld [vmem:[%s1905_s10 + $0x320] sm:$0xff]  ;;  %v333_v61 = vld [vmem:[%s1905_s10 + $0x138] sm:$0xff] }
  0xd4   : > { %v397_v62 = vld [vmem:[%s1905_s10 + $0x338] sm:$0xff] }
  0xd6   : > { %534 = vmatmul.mubr.f32.gmra.mrb[6].mxu0 %v300_v63  ;;  %694 = vmatmul.mubr.f32.gmra.mrb[6].mxu1 %v364_v0  ;;  %v332_v63 = vld [vmem:[%s1905_s10 + $0x130] sm:$0xff] }
  0xd7   : > { %538 = vmatprep.mubr.f32.mxu0 %v303_v1  ;;  %698 = vmatprep.mubr.f32.mxu1 %v367_v2  ;;  %v396_v0 = vld [vmem:[%s1905_s10 + $0x330] sm:$0xff]  ;;  %v335_v1 = vld [vmem:[%s1905_s10 + $0x148] sm:$0xff] }
  0xd8   : > { %v399_v2 = vld [vmem:[%s1905_s10 + $0x348] sm:$0xff] }
  0xda   : > { %539 = vmatmul.mubr.f32.gmra.mrb[8].mxu0 %v302_v3  ;;  %699 = vmatmul.mubr.f32.gmra.mrb[8].mxu1 %v366_v4  ;;  %v334_v3 = vld [vmem:[%s1905_s10 + $0x140] sm:$0xff] }
  0xdb   : > { %543 = vmatprep.mubr.f32.mxu0 %v305_v5  ;;  %703 = vmatprep.mubr.f32.mxu1 %v369_v6  ;;  %v398_v4 = vld [vmem:[%s1905_s10 + $0x340] sm:$0xff]  ;;  %v337_v5 = vld [vmem:[%s1905_s10 + $0x158] sm:$0xff] }
  0xdc   : > { %v401_v6 = vld [vmem:[%s1905_s10 + $0x358] sm:$0xff] }
  0xde   : > { %544 = vmatmul.mubr.f32.gmra.mrb[10].mxu0 %v304_v7  ;;  %704 = vmatmul.mubr.f32.gmra.mrb[10].mxu1 %v368_v8  ;;  %v336_v7 = vld [vmem:[%s1905_s10 + $0x150] sm:$0xff] }
  0xdf   : > { %548 = vmatprep.mubr.f32.mxu0 %v307_v9  ;;  %708 = vmatprep.mubr.f32.mxu1 %v371_v10  ;;  %v400_v8 = vld [vmem:[%s1905_s10 + $0x350] sm:$0xff]  ;;  %v339_v9 = vld [vmem:[%s1905_s10 + $0x168] sm:$0xff] }
  0xe0   : > { %v403_v10 = vld [vmem:[%s1905_s10 + $0x368] sm:$0xff] }
  0xe2   : > { %549 = vmatmul.mubr.f32.gmra.mrb[12].mxu0 %v306_v11  ;;  %709 = vmatmul.mubr.f32.gmra.mrb[12].mxu1 %v370_v12  ;;  %v338_v11 = vld [vmem:[%s1905_s10 + $0x160] sm:$0xff] }
  0xe3   : > { %553 = vmatprep.mubr.f32.mxu0 %v309_v13  ;;  %713 = vmatprep.mubr.f32.mxu1 %v373_v14  ;;  %v402_v12 = vld [vmem:[%s1905_s10 + $0x360] sm:$0xff]  ;;  %v341_v13 = vld [vmem:[%s1905_s10 + $0x178] sm:$0xff] }
  0xe4   : > { %v405_v14 = vld [vmem:[%s1905_s10 + $0x378] sm:$0xff] }
  0xe6   : > { %554 = vmatmul.mubr.f32.gmra.mrb[14].mxu0 %v308_v15  ;;  %714 = vmatmul.mubr.f32.gmra.mrb[14].mxu1 %v372_v16  ;;  %v340_v15 = vld [vmem:[%s1905_s10 + $0x170] sm:$0xff] }
  0xe7   : > { %558 = vmatprep.mubr.f32.mxu0 %v311_v17  ;;  %718 = vmatprep.mubr.f32.mxu1 %v375_v18  ;;  %v404_v16 = vld [vmem:[%s1905_s10 + $0x370] sm:$0xff]  ;;  %v343_v17 = vld [vmem:[%s1905_s10 + $0x188] sm:$0xff] }
  0xe8   : > { %v407_v18 = vld [vmem:[%s1905_s10 + $0x388] sm:$0xff] }
  0xea   : > { %559 = vmatmul.mubr.f32.gmra.mrb[16].mxu0 %v310_v19  ;;  %719 = vmatmul.mubr.f32.gmra.mrb[16].mxu1 %v374_v20  ;;  %v342_v19 = vld [vmem:[%s1905_s10 + $0x180] sm:$0xff] }
  0xeb   : > { %563 = vmatprep.mubr.f32.mxu0 %v313_v21  ;;  %723 = vmatprep.mubr.f32.mxu1 %v377_v22  ;;  %v406_v20 = vld [vmem:[%s1905_s10 + $0x380] sm:$0xff]  ;;  %v345_v21 = vld [vmem:[%s1905_s10 + $0x198] sm:$0xff] }
  0xec   : > { %v409_v22 = vld [vmem:[%s1905_s10 + $0x398] sm:$0xff] }
  0xee   : > { %564 = vmatmul.mubr.f32.gmra.mrb[18].mxu0 %v312_v23  ;;  %724 = vmatmul.mubr.f32.gmra.mrb[18].mxu1 %v376_v24  ;;  %v344_v23 = vld [vmem:[%s1905_s10 + $0x190] sm:$0xff] }
  0xef   : > { %568 = vmatprep.mubr.f32.mxu0 %v315_v25  ;;  %728 = vmatprep.mubr.f32.mxu1 %v379_v26  ;;  %v408_v24 = vld [vmem:[%s1905_s10 + $0x390] sm:$0xff]  ;;  %v347_v25 = vld [vmem:[%s1905_s10 + $0x1a8] sm:$0xff] }
  0xf0   : > { %v411_v26 = vld [vmem:[%s1905_s10 + $0x3a8] sm:$0xff] }
  0xf2   : > { %569 = vmatmul.mubr.f32.gmra.mrb[20].mxu0 %v314_v27  ;;  %729 = vmatmul.mubr.f32.gmra.mrb[20].mxu1 %v378_v28  ;;  %v346_v27 = vld [vmem:[%s1905_s10 + $0x1a0] sm:$0xff] }
  0xf3   : > { %573 = vmatprep.mubr.f32.mxu0 %v317_v29  ;;  %733 = vmatprep.mubr.f32.mxu1 %v381_v30  ;;  %v410_v28 = vld [vmem:[%s1905_s10 + $0x3a0] sm:$0xff]  ;;  %v349_v29 = vld [vmem:[%s1905_s10 + $0x1b8] sm:$0xff] }
  0xf4   : > { %v413_v30 = vld [vmem:[%s1905_s10 + $0x3b8] sm:$0xff] }
  0xf6   : > { %574 = vmatmul.mubr.f32.gmra.mrb[22].mxu0 %v316_v31  ;;  %734 = vmatmul.mubr.f32.gmra.mrb[22].mxu1 %v380_v32  ;;  %v348_v31 = vld [vmem:[%s1905_s10 + $0x1b0] sm:$0xff] }
  0xf7   : > { %578 = vmatprep.mubr.f32.mxu0 %v319_v33  ;;  %738 = vmatprep.mubr.f32.mxu1 %v383_v34  ;;  %v412_v32 = vld [vmem:[%s1905_s10 + $0x3b0] sm:$0xff]  ;;  %v351_v33 = vld [vmem:[%s1905_s10 + $0x1c8] sm:$0xff] }
  0xf8   : > { %v415_v34 = vld [vmem:[%s1905_s10 + $0x3c8] sm:$0xff] }
  0xfa   : > { %579 = vmatmul.mubr.f32.gmra.mrb[24].mxu0 %v318_v35  ;;  %739 = vmatmul.mubr.f32.gmra.mrb[24].mxu1 %v382_v36  ;;  %v350_v35 = vld [vmem:[%s1905_s10 + $0x1c0] sm:$0xff] }
  0xfb   : > { %583 = vmatprep.mubr.f32.mxu0 %v321_v37  ;;  %743 = vmatprep.mubr.f32.mxu1 %v385_v38  ;;  %v414_v36 = vld [vmem:[%s1905_s10 + $0x3c0] sm:$0xff]  ;;  %v353_v37 = vld [vmem:[%s1905_s10 + $0x1d8] sm:$0xff] }
  0xfc   : > { %v417_v38 = vld [vmem:[%s1905_s10 + $0x3d8] sm:$0xff] }
  0xfe   : > { %584 = vmatmul.mubr.f32.gmra.mrb[26].mxu0 %v320_v39  ;;  %744 = vmatmul.mubr.f32.gmra.mrb[26].mxu1 %v384_v40  ;;  %v352_v39 = vld [vmem:[%s1905_s10 + $0x1d0] sm:$0xff] }
  0xff   : > { %588 = vmatprep.mubr.f32.mxu0 %v323_v41  ;;  %748 = vmatprep.mubr.f32.mxu1 %v387_v42  ;;  %v416_v40 = vld [vmem:[%s1905_s10 + $0x3d0] sm:$0xff]  ;;  %v355_v41 = vld [vmem:[%s1905_s10 + $0x1e8] sm:$0xff] }
 0x100   : > { %v419_v42 = vld [vmem:[%s1905_s10 + $0x3e8] sm:$0xff] }
 0x102   : > { %589 = vmatmul.mubr.f32.gmra.mrb[28].mxu0 %v322_v43  ;;  %749 = vmatmul.mubr.f32.gmra.mrb[28].mxu1 %v386_v44  ;;  %v354_v43 = vld [vmem:[%s1905_s10 + $0x1e0] sm:$0xff] }
 0x103   : > { %593 = vmatprep.mubr.f32.mxu0 %v325_v45  ;;  %753 = vmatprep.mubr.f32.mxu1 %v389_v46  ;;  %v418_v44 = vld [vmem:[%s1905_s10 + $0x3e0] sm:$0xff]  ;;  %v357_v45 = vld [vmem:[%s1905_s10 + $0x1f8] sm:$0xff] }
 0x104   : > { %v421_v46 = vld [vmem:[%s1905_s10 + $0x3f8] sm:$0xff] }
 0x106   : > { %594 = vmatmul.mubr.f32.gmra.mrb[30].mxu0 %v324_v47  ;;  %754 = vmatmul.mubr.f32.gmra.mrb[30].mxu1 %v388_v48  ;;  %v356_v47 = vld [vmem:[%s1905_s10 + $0x1f0] sm:$0xff] }
 0x107   : > { %598 = vmatprep.mubr.f32.mxu0 %v327_v49  ;;  %758 = vmatprep.mubr.f32.mxu1 %v391_v50  ;;  %v420_v48 = vld [vmem:[%s1905_s10 + $0x3f0] sm:$0xff]  ;;  %v2079_v49 = vld [vmem:[#allocation7] ss:$0 sm:$0xff] }
 0x10a   : > { %599 = vmatmul.mubr.f32.gmra.mrb[32].mxu0 %v326_v51  ;;  %759 = vmatmul.mubr.f32.gmra.mrb[32].mxu1 %v390_v52  ;;  %v2081_v51 = vld [vmem:[#allocation8] ss:$0 sm:$0xff] }
 0x10b   : > { %603 = vmatprep.mubr.f32.mxu0 %v329_v53  ;;  %763 = vmatprep.mubr.f32.mxu1 %v393_v54 }
 0x10e   : > { %604 = vmatmul.mubr.f32.gmra.mrb[34].mxu0 %v328_v55  ;;  %764 = vmatmul.mubr.f32.gmra.mrb[34].mxu1 %v392_v56 }
 0x10f   : > { %608 = vmatprep.mubr.f32.mxu0 %v331_v57  ;;  %768 = vmatprep.mubr.f32.mxu1 %v395_v58 }
 0x112   : > { %609 = vmatmul.mubr.f32.gmra.mrb[36].mxu0 %v330_v59  ;;  %769 = vmatmul.mubr.f32.gmra.mrb[36].mxu1 %v394_v60 }
 0x113   : > { %613 = vmatprep.mubr.f32.mxu0 %v333_v61  ;;  %773 = vmatprep.mubr.f32.mxu1 %v397_v62 }
 0x116   : > { %614 = vmatmul.mubr.f32.gmra.mrb[38].mxu0 %v332_v63  ;;  %774 = vmatmul.mubr.f32.gmra.mrb[38].mxu1 %v396_v0 }
 0x117   : > { %618 = vmatprep.mubr.f32.mxu0 %v335_v1  ;;  %778 = vmatprep.mubr.f32.mxu1 %v399_v2 }
 0x11a   : > { %619 = vmatmul.mubr.f32.gmra.mrb[40].mxu0 %v334_v3  ;;  %779 = vmatmul.mubr.f32.gmra.mrb[40].mxu1 %v398_v4 }
 0x11b   : > { %623 = vmatprep.mubr.f32.mxu0 %v337_v5  ;;  %783 = vmatprep.mubr.f32.mxu1 %v401_v6 }
 0x11e   : > { %624 = vmatmul.mubr.f32.gmra.mrb[42].mxu0 %v336_v7  ;;  %784 = vmatmul.mubr.f32.gmra.mrb[42].mxu1 %v400_v8 }
 0x11f   : > { %628 = vmatprep.mubr.f32.mxu0 %v339_v9  ;;  %788 = vmatprep.mubr.f32.mxu1 %v403_v10 }
 0x122   : > { %629 = vmatmul.mubr.f32.gmra.mrb[44].mxu0 %v338_v11  ;;  %789 = vmatmul.mubr.f32.gmra.mrb[44].mxu1 %v402_v12 }
 0x123   : > { %633 = vmatprep.mubr.f32.mxu0 %v341_v13  ;;  %793 = vmatprep.mubr.f32.mxu1 %v405_v14 }
 0x126   : > { %634 = vmatmul.mubr.f32.gmra.mrb[46].mxu0 %v340_v15  ;;  %794 = vmatmul.mubr.f32.gmra.mrb[46].mxu1 %v404_v16 }
 0x127   : > { %638 = vmatprep.mubr.f32.mxu0 %v343_v17  ;;  %798 = vmatprep.mubr.f32.mxu1 %v407_v18 }
 0x12a   : > { %639 = vmatmul.mubr.f32.gmra.mrb[48].mxu0 %v342_v19  ;;  %799 = vmatmul.mubr.f32.gmra.mrb[48].mxu1 %v406_v20 }
 0x12b   : > { %643 = vmatprep.mubr.f32.mxu0 %v345_v21  ;;  %803 = vmatprep.mubr.f32.mxu1 %v409_v22 }
 0x12e   : > { %644 = vmatmul.mubr.f32.gmra.mrb[50].mxu0 %v344_v23  ;;  %804 = vmatmul.mubr.f32.gmra.mrb[50].mxu1 %v408_v24 }
 0x12f   : > { %648 = vmatprep.mubr.f32.mxu0 %v347_v25  ;;  %808 = vmatprep.mubr.f32.mxu1 %v411_v26 }
 0x132   : > { %649 = vmatmul.mubr.f32.gmra.mrb[52].mxu0 %v346_v27  ;;  %809 = vmatmul.mubr.f32.gmra.mrb[52].mxu1 %v410_v28 }
 0x133   : > { %653 = vmatprep.mubr.f32.mxu0 %v349_v29  ;;  %813 = vmatprep.mubr.f32.mxu1 %v413_v30 }
 0x136   : > { %654 = vmatmul.mubr.f32.gmra.mrb[54].mxu0 %v348_v31  ;;  %814 = vmatmul.mubr.f32.gmra.mrb[54].mxu1 %v412_v32 }
 0x137   : > { %658 = vmatprep.mubr.f32.mxu0 %v351_v33  ;;  %818 = vmatprep.mubr.f32.mxu1 %v415_v34 }
 0x13a   : > { %659 = vmatmul.mubr.f32.gmra.mrb[56].mxu0 %v350_v35  ;;  %819 = vmatmul.mubr.f32.gmra.mrb[56].mxu1 %v414_v36 }
 0x13b   : > { %663 = vmatprep.mubr.f32.mxu0 %v353_v37  ;;  %823 = vmatprep.mubr.f32.mxu1 %v417_v38 }
 0x13e   : > { %664 = vmatmul.mubr.f32.gmra.mrb[58].mxu0 %v352_v39  ;;  %824 = vmatmul.mubr.f32.gmra.mrb[58].mxu1 %v416_v40 }
 0x13f   : > { %668 = vmatprep.mubr.f32.mxu0 %v355_v41  ;;  %828 = vmatprep.mubr.f32.mxu1 %v419_v42 }
 0x142   : > { %669 = vmatmul.mubr.f32.gmra.mrb[60].mxu0 %v354_v43  ;;  %829 = vmatmul.mubr.f32.gmra.mrb[60].mxu1 %v418_v44 }
 0x143   : > { %673 = vmatprep.mubr.f32.mxu0 %v357_v45  ;;  %833 = vmatprep.mubr.f32.mxu1 %v421_v46 }
 0x146   : > { %674 = vmatmul.mubr.f32.gmra.mrb[62].mxu0 %v356_v47  ;;  %834 = vmatmul.mubr.f32.gmra.mrb[62].mxu1 %v420_v48 }
 0x19d   : > { %v520_v50 = vpop.f32.mrb[0].mxu0  ;;  %v680_v52 = vpop.f32.mrb[0].mxu1 }
 0x19e   : > { %v846_v53 = vmul.f32 %v2079_v49, %v520_v50  ;;  %v878_v54 = vmul.f32 %v2079_v49, %v680_v52  ;;  %v522_v55 = vpop.f32.mrb[1].mxu0  ;;  %v682_v56 = vpop.f32.mrb[1].mxu1 }
 0x1a0   : > { %v917_v57 = vadd.f32 %v2081_v51, %v846_v53  ;;  %v949_v58 = vadd.f32 %v2081_v51, %v878_v54 }
 0x1a1   : > { %v525_v59 = vpop.f32.mrb[2].mxu0  ;;  %v685_v60 = vpop.f32.mrb[2].mxu1 }
 0x1a2   : > { %v981_v61 = vmax.f32 %v917_v57, 0.0  ;;  %v1013_v62 = vmax.f32 %v949_v58, 0.0  ;;  %v847_v63 = vmul.f32 %v2079_v49, %v525_v59  ;;  %v879_v0 = vmul.f32 %v2079_v49, %v685_v60  ;;  %v527_v1 = vpop.f32.mrb[3].mxu0  ;;  %v687_v2 = vpop.f32.mrb[3].mxu1 }
 0x1a4   : > { %1045 = vst [vmem:[%s2090_s25] sm:$0xff] %v981_v61  ;;  %1077 = vst [vmem:[%s2090_s25 + $0x100] sm:$0xff] %v1013_v62  ;;  %v918_v3 = vadd.f32 %v2081_v51, %v847_v63  ;;  %v950_v4 = vadd.f32 %v2081_v51, %v879_v0 }
 0x1a5   : > { %v530_v5 = vpop.f32.mrb[4].mxu0  ;;  %v690_v6 = vpop.f32.mrb[4].mxu1 }
 0x1a6   : > { %v982_v7 = vmax.f32 %v918_v3, 0.0  ;;  %v1014_v8 = vmax.f32 %v950_v4, 0.0  ;;  %v848_v9 = vmul.f32 %v2079_v49, %v530_v5  ;;  %v880_v10 = vmul.f32 %v2079_v49, %v690_v6  ;;  %v532_v11 = vpop.f32.mrb[5].mxu0  ;;  %v692_v12 = vpop.f32.mrb[5].mxu1 }
 0x1a8   : > { %1046 = vst [vmem:[%s2090_s25 + $0x8] sm:$0xff] %v982_v7  ;;  %1078 = vst [vmem:[%s2090_s25 + $0x108] sm:$0xff] %v1014_v8  ;;  %v919_v13 = vadd.f32 %v2081_v51, %v848_v9  ;;  %v951_v14 = vadd.f32 %v2081_v51, %v880_v10 }
 0x1a9   : > { %v535_v15 = vpop.f32.mrb[6].mxu0  ;;  %v695_v16 = vpop.f32.mrb[6].mxu1 }
 0x1aa   : > { %v983_v17 = vmax.f32 %v919_v13, 0.0  ;;  %v1015_v18 = vmax.f32 %v951_v14, 0.0  ;;  %v849_v19 = vmul.f32 %v2079_v49, %v535_v15  ;;  %v881_v20 = vmul.f32 %v2079_v49, %v695_v16  ;;  %v537_v21 = vpop.f32.mrb[7].mxu0  ;;  %v697_v22 = vpop.f32.mrb[7].mxu1 }
 0x1ac   : > { %1047 = vst [vmem:[%s2090_s25 + $0x10] sm:$0xff] %v983_v17  ;;  %1079 = vst [vmem:[%s2090_s25 + $0x110] sm:$0xff] %v1015_v18  ;;  %v920_v23 = vadd.f32 %v2081_v51, %v849_v19  ;;  %v952_v24 = vadd.f32 %v2081_v51, %v881_v20 }
 0x1ad   : > { %v540_v25 = vpop.f32.mrb[8].mxu0  ;;  %v700_v26 = vpop.f32.mrb[8].mxu1 }
 0x1ae   : > { %v984_v27 = vmax.f32 %v920_v23, 0.0  ;;  %v1016_v28 = vmax.f32 %v952_v24, 0.0  ;;  %v850_v29 = vmul.f32 %v2079_v49, %v540_v25  ;;  %v882_v30 = vmul.f32 %v2079_v49, %v700_v26  ;;  %v542_v31 = vpop.f32.mrb[9].mxu0  ;;  %v702_v32 = vpop.f32.mrb[9].mxu1 }
 0x1b0   : > { %1048 = vst [vmem:[%s2090_s25 + $0x18] sm:$0xff] %v984_v27  ;;  %1080 = vst [vmem:[%s2090_s25 + $0x118] sm:$0xff] %v1016_v28  ;;  %v921_v33 = vadd.f32 %v2081_v51, %v850_v29  ;;  %v953_v34 = vadd.f32 %v2081_v51, %v882_v30 }
 0x1b1   : > { %v545_v35 = vpop.f32.mrb[10].mxu0  ;;  %v705_v36 = vpop.f32.mrb[10].mxu1 }
 0x1b2   : > { %v985_v37 = vmax.f32 %v921_v33, 0.0  ;;  %v1017_v38 = vmax.f32 %v953_v34, 0.0  ;;  %v851_v39 = vmul.f32 %v2079_v49, %v545_v35  ;;  %v883_v40 = vmul.f32 %v2079_v49, %v705_v36  ;;  %v547_v41 = vpop.f32.mrb[11].mxu0  ;;  %v707_v42 = vpop.f32.mrb[11].mxu1 }
 0x1b4   : > { %1049 = vst [vmem:[%s2090_s25 + $0x20] sm:$0xff] %v985_v37  ;;  %1081 = vst [vmem:[%s2090_s25 + $0x120] sm:$0xff] %v1017_v38  ;;  %v922_v43 = vadd.f32 %v2081_v51, %v851_v39  ;;  %v954_v44 = vadd.f32 %v2081_v51, %v883_v40 }
 0x1b5   : > { %v550_v45 = vpop.f32.mrb[12].mxu0  ;;  %v710_v46 = vpop.f32.mrb[12].mxu1 }
 0x1b6   : > { %v986_v47 = vmax.f32 %v922_v43, 0.0  ;;  %v1018_v48 = vmax.f32 %v954_v44, 0.0  ;;  %v852_v50 = vmul.f32 %v2079_v49, %v550_v45  ;;  %v884_v52 = vmul.f32 %v2079_v49, %v710_v46  ;;  %v552_v53 = vpop.f32.mrb[13].mxu0  ;;  %v712_v54 = vpop.f32.mrb[13].mxu1 }
 0x1b8   : > { %1050 = vst [vmem:[%s2090_s25 + $0x28] sm:$0xff] %v986_v47  ;;  %1082 = vst [vmem:[%s2090_s25 + $0x128] sm:$0xff] %v1018_v48  ;;  %v923_v55 = vadd.f32 %v2081_v51, %v852_v50  ;;  %v955_v56 = vadd.f32 %v2081_v51, %v884_v52 }
 0x1b9   : > { %v555_v57 = vpop.f32.mrb[14].mxu0  ;;  %v715_v58 = vpop.f32.mrb[14].mxu1 }
 0x1ba   : > { %v987_v59 = vmax.f32 %v923_v55, 0.0  ;;  %v1019_v60 = vmax.f32 %v955_v56, 0.0  ;;  %v853_v61 = vmul.f32 %v2079_v49, %v555_v57  ;;  %v885_v62 = vmul.f32 %v2079_v49, %v715_v58  ;;  %v557_v63 = vpop.f32.mrb[15].mxu0  ;;  %v717_v0 = vpop.f32.mrb[15].mxu1 }
 0x1bc   : > { %1051 = vst [vmem:[%s2090_s25 + $0x30] sm:$0xff] %v987_v59  ;;  %1083 = vst [vmem:[%s2090_s25 + $0x130] sm:$0xff] %v1019_v60  ;;  %v924_v1 = vadd.f32 %v2081_v51, %v853_v61  ;;  %v956_v2 = vadd.f32 %v2081_v51, %v885_v62 }
 0x1bd   : > { %v560_v3 = vpop.f32.mrb[16].mxu0  ;;  %v720_v4 = vpop.f32.mrb[16].mxu1 }
 0x1be   : > { %v988_v5 = vmax.f32 %v924_v1, 0.0  ;;  %v1020_v6 = vmax.f32 %v956_v2, 0.0  ;;  %v854_v7 = vmul.f32 %v2079_v49, %v560_v3  ;;  %v886_v8 = vmul.f32 %v2079_v49, %v720_v4  ;;  %v562_v9 = vpop.f32.mrb[17].mxu0  ;;  %v722_v10 = vpop.f32.mrb[17].mxu1 }
 0x1c0   : > { %1052 = vst [vmem:[%s2090_s25 + $0x38] sm:$0xff] %v988_v5  ;;  %1084 = vst [vmem:[%s2090_s25 + $0x138] sm:$0xff] %v1020_v6  ;;  %v925_v11 = vadd.f32 %v2081_v51, %v854_v7  ;;  %v957_v12 = vadd.f32 %v2081_v51, %v886_v8 }
 0x1c1   : > { %v565_v13 = vpop.f32.mrb[18].mxu0  ;;  %v725_v14 = vpop.f32.mrb[18].mxu1 }
 0x1c2   : > { %v989_v15 = vmax.f32 %v925_v11, 0.0  ;;  %v1021_v16 = vmax.f32 %v957_v12, 0.0  ;;  %v855_v17 = vmul.f32 %v2079_v49, %v565_v13  ;;  %v887_v18 = vmul.f32 %v2079_v49, %v725_v14  ;;  %v567_v19 = vpop.f32.mrb[19].mxu0  ;;  %v727_v20 = vpop.f32.mrb[19].mxu1 }
 0x1c4   : > { %1053 = vst [vmem:[%s2090_s25 + $0x40] sm:$0xff] %v989_v15  ;;  %1085 = vst [vmem:[%s2090_s25 + $0x140] sm:$0xff] %v1021_v16  ;;  %v926_v21 = vadd.f32 %v2081_v51, %v855_v17  ;;  %v958_v22 = vadd.f32 %v2081_v51, %v887_v18 }
 0x1c5   : > { %v570_v23 = vpop.f32.mrb[20].mxu0  ;;  %v730_v24 = vpop.f32.mrb[20].mxu1 }
 0x1c6   : > { %v990_v25 = vmax.f32 %v926_v21, 0.0  ;;  %v1022_v26 = vmax.f32 %v958_v22, 0.0  ;;  %v856_v27 = vmul.f32 %v2079_v49, %v570_v23  ;;  %v888_v28 = vmul.f32 %v2079_v49, %v730_v24  ;;  %v572_v29 = vpop.f32.mrb[21].mxu0  ;;  %v732_v30 = vpop.f32.mrb[21].mxu1 }
 0x1c8   : > { %1054 = vst [vmem:[%s2090_s25 + $0x48] sm:$0xff] %v990_v25  ;;  %1086 = vst [vmem:[%s2090_s25 + $0x148] sm:$0xff] %v1022_v26  ;;  %v927_v31 = vadd.f32 %v2081_v51, %v856_v27  ;;  %v959_v32 = vadd.f32 %v2081_v51, %v888_v28 }
 0x1c9   : > { %v575_v33 = vpop.f32.mrb[22].mxu0  ;;  %v735_v34 = vpop.f32.mrb[22].mxu1 }
 0x1ca   : > { %v991_v35 = vmax.f32 %v927_v31, 0.0  ;;  %v1023_v36 = vmax.f32 %v959_v32, 0.0  ;;  %v857_v37 = vmul.f32 %v2079_v49, %v575_v33  ;;  %v889_v38 = vmul.f32 %v2079_v49, %v735_v34  ;;  %v577_v39 = vpop.f32.mrb[23].mxu0  ;;  %v737_v40 = vpop.f32.mrb[23].mxu1 }
 0x1cc   : > { %1055 = vst [vmem:[%s2090_s25 + $0x50] sm:$0xff] %v991_v35  ;;  %1087 = vst [vmem:[%s2090_s25 + $0x150] sm:$0xff] %v1023_v36  ;;  %v928_v41 = vadd.f32 %v2081_v51, %v857_v37  ;;  %v960_v42 = vadd.f32 %v2081_v51, %v889_v38 }
 0x1cd   : > { %v580_v43 = vpop.f32.mrb[24].mxu0  ;;  %v740_v44 = vpop.f32.mrb[24].mxu1 }
 0x1ce   : > { %v992_v45 = vmax.f32 %v928_v41, 0.0  ;;  %v1024_v46 = vmax.f32 %v960_v42, 0.0  ;;  %v858_v47 = vmul.f32 %v2079_v49, %v580_v43  ;;  %v890_v48 = vmul.f32 %v2079_v49, %v740_v44  ;;  %v582_v50 = vpop.f32.mrb[25].mxu0  ;;  %v742_v52 = vpop.f32.mrb[25].mxu1 }
 0x1d0   : > { %1056 = vst [vmem:[%s2090_s25 + $0x58] sm:$0xff] %v992_v45  ;;  %1088 = vst [vmem:[%s2090_s25 + $0x158] sm:$0xff] %v1024_v46  ;;  %v929_v53 = vadd.f32 %v2081_v51, %v858_v47  ;;  %v961_v54 = vadd.f32 %v2081_v51, %v890_v48 }
 0x1d1   : > { %v585_v55 = vpop.f32.mrb[26].mxu0  ;;  %v745_v56 = vpop.f32.mrb[26].mxu1 }
 0x1d2   : > { %v993_v57 = vmax.f32 %v929_v53, 0.0  ;;  %v1025_v58 = vmax.f32 %v961_v54, 0.0  ;;  %v859_v59 = vmul.f32 %v2079_v49, %v585_v55  ;;  %v891_v60 = vmul.f32 %v2079_v49, %v745_v56  ;;  %v587_v61 = vpop.f32.mrb[27].mxu0  ;;  %v747_v62 = vpop.f32.mrb[27].mxu1 }
 0x1d4   : > { %1057 = vst [vmem:[%s2090_s25 + $0x60] sm:$0xff] %v993_v57  ;;  %1089 = vst [vmem:[%s2090_s25 + $0x160] sm:$0xff] %v1025_v58  ;;  %v930_v63 = vadd.f32 %v2081_v51, %v859_v59  ;;  %v962_v0 = vadd.f32 %v2081_v51, %v891_v60 }
 0x1d5   : > { %v590_v1 = vpop.f32.mrb[28].mxu0  ;;  %v750_v2 = vpop.f32.mrb[28].mxu1 }
 0x1d6   : > { %v994_v3 = vmax.f32 %v930_v63, 0.0  ;;  %v1026_v4 = vmax.f32 %v962_v0, 0.0  ;;  %v860_v5 = vmul.f32 %v2079_v49, %v590_v1  ;;  %v892_v6 = vmul.f32 %v2079_v49, %v750_v2  ;;  %v592_v7 = vpop.f32.mrb[29].mxu0  ;;  %v752_v8 = vpop.f32.mrb[29].mxu1 }
 0x1d8   : > { %1058 = vst [vmem:[%s2090_s25 + $0x68] sm:$0xff] %v994_v3  ;;  %1090 = vst [vmem:[%s2090_s25 + $0x168] sm:$0xff] %v1026_v4  ;;  %v931_v9 = vadd.f32 %v2081_v51, %v860_v5  ;;  %v963_v10 = vadd.f32 %v2081_v51, %v892_v6 }
 0x1d9   : > { %v595_v11 = vpop.f32.mrb[30].mxu0  ;;  %v755_v12 = vpop.f32.mrb[30].mxu1 }
 0x1da   : > { %v995_v13 = vmax.f32 %v931_v9, 0.0  ;;  %v1027_v14 = vmax.f32 %v963_v10, 0.0  ;;  %v861_v15 = vmul.f32 %v2079_v49, %v595_v11  ;;  %v893_v16 = vmul.f32 %v2079_v49, %v755_v12  ;;  %v597_v17 = vpop.f32.mrb[31].mxu0  ;;  %v757_v18 = vpop.f32.mrb[31].mxu1 }
 0x1dc   : > { %1059 = vst [vmem:[%s2090_s25 + $0x70] sm:$0xff] %v995_v13  ;;  %1091 = vst [vmem:[%s2090_s25 + $0x170] sm:$0xff] %v1027_v14  ;;  %v932_v19 = vadd.f32 %v2081_v51, %v861_v15  ;;  %v964_v20 = vadd.f32 %v2081_v51, %v893_v16 }
 0x1dd   : > { %v600_v21 = vpop.f32.mrb[32].mxu0  ;;  %v760_v22 = vpop.f32.mrb[32].mxu1 }
 0x1de   : > { %v996_v23 = vmax.f32 %v932_v19, 0.0  ;;  %v1028_v24 = vmax.f32 %v964_v20, 0.0  ;;  %v862_v25 = vmul.f32 %v2079_v49, %v600_v21  ;;  %v894_v26 = vmul.f32 %v2079_v49, %v760_v22  ;;  %v602_v27 = vpop.f32.mrb[33].mxu0  ;;  %v762_v28 = vpop.f32.mrb[33].mxu1 }
 0x1e0   : > { %1060 = vst [vmem:[%s2090_s25 + $0x78] sm:$0xff] %v996_v23  ;;  %1092 = vst [vmem:[%s2090_s25 + $0x178] sm:$0xff] %v1028_v24  ;;  %v933_v29 = vadd.f32 %v2081_v51, %v862_v25  ;;  %v965_v30 = vadd.f32 %v2081_v51, %v894_v26 }
 0x1e1   : > { %v605_v31 = vpop.f32.mrb[34].mxu0  ;;  %v765_v32 = vpop.f32.mrb[34].mxu1 }
 0x1e2   : > { %v997_v33 = vmax.f32 %v933_v29, 0.0  ;;  %v1029_v34 = vmax.f32 %v965_v30, 0.0  ;;  %v863_v35 = vmul.f32 %v2079_v49, %v605_v31  ;;  %v895_v36 = vmul.f32 %v2079_v49, %v765_v32  ;;  %v607_v37 = vpop.f32.mrb[35].mxu0  ;;  %v767_v38 = vpop.f32.mrb[35].mxu1 }
 0x1e4   : > { %1061 = vst [vmem:[%s2090_s25 + $0x80] sm:$0xff] %v997_v33  ;;  %1093 = vst [vmem:[%s2090_s25 + $0x180] sm:$0xff] %v1029_v34  ;;  %v934_v39 = vadd.f32 %v2081_v51, %v863_v35  ;;  %v966_v40 = vadd.f32 %v2081_v51, %v895_v36 }
 0x1e5   : > { %v610_v41 = vpop.f32.mrb[36].mxu0  ;;  %v770_v42 = vpop.f32.mrb[36].mxu1 }
 0x1e6   : > { %v998_v43 = vmax.f32 %v934_v39, 0.0  ;;  %v1030_v44 = vmax.f32 %v966_v40, 0.0  ;;  %v864_v45 = vmul.f32 %v2079_v49, %v610_v41  ;;  %v896_v46 = vmul.f32 %v2079_v49, %v770_v42  ;;  %v612_v47 = vpop.f32.mrb[37].mxu0  ;;  %v772_v48 = vpop.f32.mrb[37].mxu1 }
 0x1e8   : > { %1062 = vst [vmem:[%s2090_s25 + $0x88] sm:$0xff] %v998_v43  ;;  %1094 = vst [vmem:[%s2090_s25 + $0x188] sm:$0xff] %v1030_v44  ;;  %v935_v50 = vadd.f32 %v2081_v51, %v864_v45  ;;  %v967_v52 = vadd.f32 %v2081_v51, %v896_v46 }
 0x1e9   : > { %v615_v53 = vpop.f32.mrb[38].mxu0  ;;  %v775_v54 = vpop.f32.mrb[38].mxu1 }
 0x1ea   : > { %v999_v55 = vmax.f32 %v935_v50, 0.0  ;;  %v1031_v56 = vmax.f32 %v967_v52, 0.0  ;;  %v865_v57 = vmul.f32 %v2079_v49, %v615_v53  ;;  %v897_v58 = vmul.f32 %v2079_v49, %v775_v54  ;;  %v617_v59 = vpop.f32.mrb[39].mxu0  ;;  %v777_v60 = vpop.f32.mrb[39].mxu1 }
 0x1ec   : > { %1063 = vst [vmem:[%s2090_s25 + $0x90] sm:$0xff] %v999_v55  ;;  %1095 = vst [vmem:[%s2090_s25 + $0x190] sm:$0xff] %v1031_v56  ;;  %v936_v61 = vadd.f32 %v2081_v51, %v865_v57  ;;  %v968_v62 = vadd.f32 %v2081_v51, %v897_v58 }
 0x1ed   : > { %v620_v63 = vpop.f32.mrb[40].mxu0  ;;  %v780_v0 = vpop.f32.mrb[40].mxu1 }
 0x1ee   : > { %v1000_v1 = vmax.f32 %v936_v61, 0.0  ;;  %v1032_v2 = vmax.f32 %v968_v62, 0.0  ;;  %v866_v3 = vmul.f32 %v2079_v49, %v620_v63  ;;  %v898_v4 = vmul.f32 %v2079_v49, %v780_v0  ;;  %v622_v5 = vpop.f32.mrb[41].mxu0  ;;  %v782_v6 = vpop.f32.mrb[41].mxu1 }
 0x1f0   : > { %1064 = vst [vmem:[%s2090_s25 + $0x98] sm:$0xff] %v1000_v1  ;;  %1096 = vst [vmem:[%s2090_s25 + $0x198] sm:$0xff] %v1032_v2  ;;  %v937_v7 = vadd.f32 %v2081_v51, %v866_v3  ;;  %v969_v8 = vadd.f32 %v2081_v51, %v898_v4 }
 0x1f1   : > { %v625_v9 = vpop.f32.mrb[42].mxu0  ;;  %v785_v10 = vpop.f32.mrb[42].mxu1 }
 0x1f2   : > { %v1001_v11 = vmax.f32 %v937_v7, 0.0  ;;  %v1033_v12 = vmax.f32 %v969_v8, 0.0  ;;  %v867_v13 = vmul.f32 %v2079_v49, %v625_v9  ;;  %v899_v14 = vmul.f32 %v2079_v49, %v785_v10  ;;  %v627_v15 = vpop.f32.mrb[43].mxu0  ;;  %v787_v16 = vpop.f32.mrb[43].mxu1 }
 0x1f4   : > { %1065 = vst [vmem:[%s2090_s25 + $0xa0] sm:$0xff] %v1001_v11  ;;  %1097 = vst [vmem:[%s2090_s25 + $0x1a0] sm:$0xff] %v1033_v12  ;;  %v938_v17 = vadd.f32 %v2081_v51, %v867_v13  ;;  %v970_v18 = vadd.f32 %v2081_v51, %v899_v14 }
 0x1f5   : > { %v630_v19 = vpop.f32.mrb[44].mxu0  ;;  %v790_v20 = vpop.f32.mrb[44].mxu1 }
 0x1f6   : > { %v1002_v21 = vmax.f32 %v938_v17, 0.0  ;;  %v1034_v22 = vmax.f32 %v970_v18, 0.0  ;;  %v868_v23 = vmul.f32 %v2079_v49, %v630_v19  ;;  %v900_v24 = vmul.f32 %v2079_v49, %v790_v20  ;;  %v632_v25 = vpop.f32.mrb[45].mxu0  ;;  %v792_v26 = vpop.f32.mrb[45].mxu1 }
 0x1f8   : > { %1066 = vst [vmem:[%s2090_s25 + $0xa8] sm:$0xff] %v1002_v21  ;;  %1098 = vst [vmem:[%s2090_s25 + $0x1a8] sm:$0xff] %v1034_v22  ;;  %v939_v27 = vadd.f32 %v2081_v51, %v868_v23  ;;  %v971_v28 = vadd.f32 %v2081_v51, %v900_v24 }
 0x1f9   : > { %v635_v29 = vpop.f32.mrb[46].mxu0  ;;  %v795_v30 = vpop.f32.mrb[46].mxu1 }
 0x1fa   : > { %v1003_v31 = vmax.f32 %v939_v27, 0.0  ;;  %v1035_v32 = vmax.f32 %v971_v28, 0.0  ;;  %v869_v33 = vmul.f32 %v2079_v49, %v635_v29  ;;  %v901_v34 = vmul.f32 %v2079_v49, %v795_v30  ;;  %v637_v35 = vpop.f32.mrb[47].mxu0  ;;  %v797_v36 = vpop.f32.mrb[47].mxu1 }
 0x1fc   : > { %1067 = vst [vmem:[%s2090_s25 + $0xb0] sm:$0xff] %v1003_v31  ;;  %1099 = vst [vmem:[%s2090_s25 + $0x1b0] sm:$0xff] %v1035_v32  ;;  %v940_v37 = vadd.f32 %v2081_v51, %v869_v33  ;;  %v972_v38 = vadd.f32 %v2081_v51, %v901_v34 }
 0x1fd   : > { %v640_v39 = vpop.f32.mrb[48].mxu0  ;;  %v800_v40 = vpop.f32.mrb[48].mxu1 }
 0x1fe   : > { %v1004_v41 = vmax.f32 %v940_v37, 0.0  ;;  %v1036_v42 = vmax.f32 %v972_v38, 0.0  ;;  %v870_v43 = vmul.f32 %v2079_v49, %v640_v39  ;;  %v902_v44 = vmul.f32 %v2079_v49, %v800_v40  ;;  %v642_v45 = vpop.f32.mrb[49].mxu0  ;;  %v802_v46 = vpop.f32.mrb[49].mxu1 }
 0x200   : > { %1068 = vst [vmem:[%s2090_s25 + $0xb8] sm:$0xff] %v1004_v41  ;;  %1100 = vst [vmem:[%s2090_s25 + $0x1b8] sm:$0xff] %v1036_v42  ;;  %v941_v47 = vadd.f32 %v2081_v51, %v870_v43  ;;  %v973_v48 = vadd.f32 %v2081_v51, %v902_v44 }
 0x201   : > { %v645_v50 = vpop.f32.mrb[50].mxu0  ;;  %v805_v52 = vpop.f32.mrb[50].mxu1 }
 0x202   : > { %v1005_v53 = vmax.f32 %v941_v47, 0.0  ;;  %v1037_v54 = vmax.f32 %v973_v48, 0.0  ;;  %v871_v55 = vmul.f32 %v2079_v49, %v645_v50  ;;  %v903_v56 = vmul.f32 %v2079_v49, %v805_v52  ;;  %v647_v57 = vpop.f32.mrb[51].mxu0  ;;  %v807_v58 = vpop.f32.mrb[51].mxu1 }
 0x204   : > { %1069 = vst [vmem:[%s2090_s25 + $0xc0] sm:$0xff] %v1005_v53  ;;  %1101 = vst [vmem:[%s2090_s25 + $0x1c0] sm:$0xff] %v1037_v54  ;;  %v942_v59 = vadd.f32 %v2081_v51, %v871_v55  ;;  %v974_v60 = vadd.f32 %v2081_v51, %v903_v56 }
 0x205   : > { %v650_v61 = vpop.f32.mrb[52].mxu0  ;;  %v810_v62 = vpop.f32.mrb[52].mxu1 }
 0x206   : > { %v1006_v63 = vmax.f32 %v942_v59, 0.0  ;;  %v1038_v0 = vmax.f32 %v974_v60, 0.0  ;;  %v872_v1 = vmul.f32 %v2079_v49, %v650_v61  ;;  %v904_v2 = vmul.f32 %v2079_v49, %v810_v62  ;;  %v652_v3 = vpop.f32.mrb[53].mxu0  ;;  %v812_v4 = vpop.f32.mrb[53].mxu1 }
 0x208   : > { %1070 = vst [vmem:[%s2090_s25 + $0xc8] sm:$0xff] %v1006_v63  ;;  %1102 = vst [vmem:[%s2090_s25 + $0x1c8] sm:$0xff] %v1038_v0  ;;  %v943_v5 = vadd.f32 %v2081_v51, %v872_v1  ;;  %v975_v6 = vadd.f32 %v2081_v51, %v904_v2 }
 0x209   : > { %v655_v7 = vpop.f32.mrb[54].mxu0  ;;  %v815_v8 = vpop.f32.mrb[54].mxu1 }
 0x20a   : > { %v1007_v9 = vmax.f32 %v943_v5, 0.0  ;;  %v1039_v10 = vmax.f32 %v975_v6, 0.0  ;;  %v873_v11 = vmul.f32 %v2079_v49, %v655_v7  ;;  %v905_v12 = vmul.f32 %v2079_v49, %v815_v8  ;;  %v657_v13 = vpop.f32.mrb[55].mxu0  ;;  %v817_v14 = vpop.f32.mrb[55].mxu1 }
 0x20c   : > { %1071 = vst [vmem:[%s2090_s25 + $0xd0] sm:$0xff] %v1007_v9  ;;  %1103 = vst [vmem:[%s2090_s25 + $0x1d0] sm:$0xff] %v1039_v10  ;;  %v944_v15 = vadd.f32 %v2081_v51, %v873_v11  ;;  %v976_v16 = vadd.f32 %v2081_v51, %v905_v12 }
 0x20d   : > { %v660_v17 = vpop.f32.mrb[56].mxu0  ;;  %v820_v18 = vpop.f32.mrb[56].mxu1 }
 0x20e   : > { %v1008_v19 = vmax.f32 %v944_v15, 0.0  ;;  %v1040_v20 = vmax.f32 %v976_v16, 0.0  ;;  %v874_v21 = vmul.f32 %v2079_v49, %v660_v17  ;;  %v906_v22 = vmul.f32 %v2079_v49, %v820_v18  ;;  %v662_v23 = vpop.f32.mrb[57].mxu0  ;;  %v822_v24 = vpop.f32.mrb[57].mxu1 }
 0x210   : > { %1072 = vst [vmem:[%s2090_s25 + $0xd8] sm:$0xff] %v1008_v19  ;;  %1104 = vst [vmem:[%s2090_s25 + $0x1d8] sm:$0xff] %v1040_v20  ;;  %v945_v25 = vadd.f32 %v2081_v51, %v874_v21  ;;  %v977_v26 = vadd.f32 %v2081_v51, %v906_v22 }
 0x211   : > { %v665_v27 = vpop.f32.mrb[58].mxu0  ;;  %v825_v28 = vpop.f32.mrb[58].mxu1 }
 0x212   : > { %v1009_v29 = vmax.f32 %v945_v25, 0.0  ;;  %v1041_v30 = vmax.f32 %v977_v26, 0.0  ;;  %v875_v31 = vmul.f32 %v2079_v49, %v665_v27  ;;  %v907_v32 = vmul.f32 %v2079_v49, %v825_v28  ;;  %v667_v33 = vpop.f32.mrb[59].mxu0  ;;  %v827_v34 = vpop.f32.mrb[59].mxu1 }
 0x214   : > { %1073 = vst [vmem:[%s2090_s25 + $0xe0] sm:$0xff] %v1009_v29  ;;  %1105 = vst [vmem:[%s2090_s25 + $0x1e0] sm:$0xff] %v1041_v30  ;;  %v946_v35 = vadd.f32 %v2081_v51, %v875_v31  ;;  %v978_v36 = vadd.f32 %v2081_v51, %v907_v32 }
 0x215   : > { %v670_v37 = vpop.f32.mrb[60].mxu0  ;;  %v830_v38 = vpop.f32.mrb[60].mxu1 }
 0x216   : > { %v1010_v39 = vmax.f32 %v946_v35, 0.0  ;;  %v1042_v40 = vmax.f32 %v978_v36, 0.0  ;;  %v876_v41 = vmul.f32 %v2079_v49, %v670_v37  ;;  %v908_v42 = vmul.f32 %v2079_v49, %v830_v38  ;;  %v672_v43 = vpop.f32.mrb[61].mxu0  ;;  %v832_v44 = vpop.f32.mrb[61].mxu1 }
 0x218   : > { %1074 = vst [vmem:[%s2090_s25 + $0xe8] sm:$0xff] %v1010_v39  ;;  %1106 = vst [vmem:[%s2090_s25 + $0x1e8] sm:$0xff] %v1042_v40  ;;  %v947_v45 = vadd.f32 %v2081_v51, %v876_v41  ;;  %v979_v46 = vadd.f32 %v2081_v51, %v908_v42 }
 0x219   : > { %v675_v47 = vpop.f32.mrb[62].mxu0  ;;  %v835_v48 = vpop.f32.mrb[62].mxu1 }
 0x21a   : > { %v1011_v50 = vmax.f32 %v947_v45, 0.0  ;;  %v1043_v52 = vmax.f32 %v979_v46, 0.0  ;;  %v877_v53 = vmul.f32 %v2079_v49, %v675_v47  ;;  %v909_v54 = vmul.f32 %v2079_v49, %v835_v48  ;;  %v677_v55 = vpop.f32.mrb[63].mxu0  ;;  %v837_v56 = vpop.f32.mrb[63].mxu1 }
 0x21c   : > { %1075 = vst [vmem:[%s2090_s25 + $0xf0] sm:$0xff] %v1011_v50  ;;  %1107 = vst [vmem:[%s2090_s25 + $0x1f0] sm:$0xff] %v1043_v52  ;;  %v948_v57 = vadd.f32 %v2081_v51, %v877_v53  ;;  %v980_v58 = vadd.f32 %v2081_v51, %v909_v54 }
 0x21e   : > { %v1012_v49 = vmax.f32 %v948_v57, 0.0  ;;  %v1044_v59 = vmax.f32 %v980_v58, 0.0 }
 0x220   : > { %1076 = vst [vmem:[%s2090_s25 + $0xf8] sm:$0xff] %v1012_v49  ;;  %1108 = vst [vmem:[%s2090_s25 + $0x1f8] sm:$0xff] %v1044_v59 }
 0x221   : > { %1576 = shalt.err (!%p1573_p13)
}
 0x222   : > { %s1577_s29 = scalar_lea.hbm %s2281_s6, 8192  ;;  %s1581_s8 = scalar_lea.hbm %s2337_s4, 32768 }
 0x223   : > { %p1578_p4 = scmp.ne.s32.totalorder %s2281_s6, %s1577_s29  ;;  %p1582_p11 = scmp.lt.u32.totalorder %s2281_s6, %s2337_s4 }
 0x224   : > { %p1583_p1 = scmp.lt.u32.totalorder %s1581_s8, %s1577_s29  ;;  %p1585_p12 = scmp.lt.u32.totalorder %s1577_s29, %s2281_s6 }
 0x225   : > { %p1579_p2 = pnand %p1578_p4, %p1843_p0 }
 0x226   : > { %p1584_p10 = por %p1583_p1, %p1582_p11 }
 0x227   : > { %p1580_p8 = pneg %p1579_p2 }
 0x228   : > { %p1586_p6 = por %p1585_p12, %p1584_p10 }
 0x22a   : > { %p1587_p3 = pnand %p1586_p6, %p1580_p8 }
 0x22c   : > { %1590 = shalt.err (!%p1587_p3)
}
 0x22d   : > { %s1665_s25 = smov 128   ;;  %s1666_s27 = smov 8  }
 0x22e   : > { %1363 = dma.vmem_to_hbm [thread:$0]  (%p1843_p0), %s2283_s24, 8192, %s2281_s6, %s1110_s18, %s1665_s25, %s1665_s25, %s1666_s27  }
 0x22f PF: > { %s2357_s22 = sld [smem:[#allocation15_spill]]  ;;  %p1390_p5 = scmp.ge.s32.totalorder %s1653_s20, 2 }
 0x230   : > { %s1139_s28 = sand.u32 1, %s1633_s15  }
 0x231   : > { %s1140_s7 = scalar_lea.sflag [#allocation4], %s1139_s28 }
 0x235   : > { %p2358_p7 = scmp.ne.s32.totalorder %s2357_s22, 0 }
 0x237   : > { %p1380_p9 = pnand %p1390_p5, %p2358_p7 }
 0x239   : > { %1628 = dma.done.wait (!%p1380_p9), %s1140_s7, 8192  }
 0x23a   : > { %1630 = vsyncadd (!%p1380_p9), %s1140_s7, 4294959104  ;;  %s22_s20 = sadd.s32 1, %s1653_s20   ;;  %s2359_s15 = smov %s1637_s16 }
 0x23b   : > { %p19_p13 = scmp.ge.s32.totalorder %s22_s20, 6   ;;  %s2360_s16 = smov %s1641_s17 }
 0x23c   : > { %s2361_s17 = smov %s1855_s11  ;;  %s2362_s18 = smov %s1649_s19 }
 0x23d   : > { %s2363_s19 = smov %s2365_s26  ;;  %21 = sbr.rel (!%p19_p13) target bundleno = 8 (0x8), region = 96 }
 0x244   :  { %1145 = vsyncpa [#allocation3], 1 }
 0x245   :  { %1147 = vsyncpa [#allocation3 + $0x1], 1 }
 0x246   :  { %1148 = vsyncpa [#allocation6], 1 }
 0x247   :  { %1149 = vsyncpa [#allocation9], 1 }
 0x248   :  { %1150 = vsyncpa [#allocation4], 1 }
 0x249   :  { %1152 = vsyncpa [#allocation4 + $0x1], 1 }

</bundles_post_ra>
